<compile_context>
chip_gen: v7x
topology: tpu7x:2x2x1
jax: 0.10.0
libtpu: 0.0.40
codegen_flags: <defaults>
</compile_context>

<pallas_src>
import functools
import math

import jax
import jax.numpy as jnp
from jax import lax
from jax.experimental import pallas as pl
from jax.experimental.pallas import tpu as pltpu


def _gelu_exact(x):
    # PyTorch nn.GELU() default is the exact erf-based GELU.
    return 0.5 * x * (1.0 + lax.erf(x * (1.0 / math.sqrt(2.0))))


def encoder_kernel(
    # inputs
    x_ref,                              # (rows, D) rows of this batch tile (f32)
    g1_ref, b1_ref,                     # LayerNorm 1 (1, D) f32
    wq_ref, bq_ref,                     # query  weights (H, D, hd) bf16 / bias (H, 1, hd) f32
    wk_ref, bk_ref,                     # key
    wv_ref, bv_ref,                     # value
    g2_ref, b2_ref,                     # LayerNorm 2 (1, D) f32
    w1_ref, bb1_ref,                    # MLP linear 1 (D, Hmlp) bf16 / (1, Hmlp) f32
    w2_ref, bb2_ref,                    # MLP linear 2 (Hmlp, D) bf16 / (1, D) f32
    # outputs
    out_ref,                            # (rows, D) f32
    att_ref,                            # (BT, H, S, S) f32
    # scratch
    attn_scratch,                       # (rows, D) f32 VMEM
    *, num_heads, head_dim, seq_len, batch_tile, mlp_chunk,
):
    eps = 1e-5
    H, hd, S, BT = num_heads, head_dim, seq_len, batch_tile
    D = H * hd
    rows = BT * S

    x = x_ref[...].astype(jnp.float32)                      # (rows, D)

    # ----- LayerNorm 1 (row-wise; batch folded into rows) -----
    mu = jnp.mean(x, axis=-1, keepdims=True)
    var = jnp.mean((x - mu) ** 2, axis=-1, keepdims=True)
    z = (x - mu) * lax.rsqrt(var + eps) * g1_ref[0:1, :] + b1_ref[0:1, :]
    z_bf = z.astype(jnp.bfloat16)                           # MXU operand

    # ----- Multi-head self attention -----
    # Head-blocked weights: each head's q/k/v is produced lane-contiguous
    # (width hd), so no lane-dim slicing of activations and no concat.
    inv_scale = 1.0 / math.sqrt(float(hd))
    for h in range(H):                                      # static, small
        qh = (jnp.dot(z_bf, wq_ref[h], preferred_element_type=jnp.float32)
              + bq_ref[h])                                  # (rows, hd) f32
        kh = (jnp.dot(z_bf, wk_ref[h], preferred_element_type=jnp.float32)
              + bk_ref[h])
        vh = (jnp.dot(z_bf, wv_ref[h], preferred_element_type=jnp.float32)
              + bv_ref[h])

        # (rows, hd) -> (BT, S, hd): splits the major (row) axis only.
        q3 = qh.reshape(BT, S, hd).astype(jnp.bfloat16)
        k3 = kh.reshape(BT, S, hd).astype(jnp.bfloat16)
        v3 = vh.reshape(BT, S, hd).astype(jnp.bfloat16)

        # Batched over the batch tile; contraction on the last dim (no kh.T).
        s = jnp.einsum('bqd,bkd->bqk', q3, k3,
                       preferred_element_type=jnp.float32) * inv_scale
        m = jnp.max(s, axis=-1, keepdims=True)
        p = jnp.exp(s - m)
        # Exact normalization so the stored attention map matches softmax.
        p = p / jnp.sum(p, axis=-1, keepdims=True)
        att_ref[:, h, :, :] = p.astype(att_ref.dtype)

        o = jnp.einsum('bqk,bkd->bqd', p.astype(jnp.bfloat16), v3,
                       preferred_element_type=jnp.float32)   # (BT, S, hd)
        # Write this head's output into its static column range (no concat).
        attn_scratch[:, h * hd:(h + 1) * hd] = o.reshape(rows, hd)

    # ----- residual 1 -----
    x1 = x + attn_scratch[...]

    # ----- LayerNorm 2 -----
    mu2 = jnp.mean(x1, axis=-1, keepdims=True)
    var2 = jnp.mean((x1 - mu2) ** 2, axis=-1, keepdims=True)
    z2 = (x1 - mu2) * lax.rsqrt(var2 + eps) * g2_ref[0:1, :] + b2_ref[0:1, :]
    z2_bf = z2.astype(jnp.bfloat16)

    # ----- MLP: Linear -> GELU -> Linear, hidden dim chunked to bound VMEM -----
    Hmlp = w1_ref.shape[1]
    h2 = jnp.zeros((rows, D), jnp.float32)
    for start in range(0, Hmlp, mlp_chunk):                 # static chunk loop
        ck = min(mlp_chunk, Hmlp - start)
        h1c = (jnp.dot(z2_bf, w1_ref[:, start:start + ck],
                       preferred_element_type=jnp.float32)
               + bb1_ref[0:1, start:start + ck])
        h1c = _gelu_exact(h1c)
        h2 = h2 + jnp.dot(h1c.astype(jnp.bfloat16),
                          w2_ref[start:start + ck, :],
                          preferred_element_type=jnp.float32)
    h2 = h2 + bb2_ref[0:1, :]

    # ----- residual 2, single dense store -----
    out_ref[...] = (x1 + h2).astype(out_ref.dtype)


def _vmem_limit_bytes(rows, D, Hmlp, num_heads, bt, S, mlp_chunk):
    """Generation-aware VMEM hint: resident (single-buffered) weights +
    double-buffered per-step I/O blocks + live temporaries, with headroom."""
    f32, bf16 = 4, 2
    weights = (3 * D * D + 2 * D * Hmlp) * bf16 + (7 * D + Hmlp) * f32
    io = (2 * rows * D + bt * num_heads * S * S) * f32        # x + out + att block
    interm = (rows * (6 * D + 3 * (D // num_heads) + 2 * mlp_chunk) * f32
              + 2 * bt * S * S * f32)
    need = weights + 2 * io + interm
    try:
        cap = pltpu.get_tpu_info().vmem_capacity_bytes
    except Exception:  # pragma: no cover - conservative fallback
        cap = 128 * 2**20
    return int(min(0.85 * cap, max(32 * 2**20, 1.5 * need)))


def _default_batch_tile(B, S):
    """Pick batch_tile so rows-per-step ~ a few hundred AND the grid has >= 2
    steps (pipelining + v7x dual-TC), while dividing B."""
    target_rows = 512
    bt = max(1, min(B, target_rows // max(S, 1)))
    while B % bt:
        bt -= 1
    if B >= 2 and B // bt < 2:
        bt = max(1, B // 2)
        while B % bt:
            bt -= 1
    return max(1, bt)


def tf_encoder_cls(x, params, *, num_heads, batch_tile=None):
    B, S, D = x.shape
    head_dim = D // num_heads
    Hmlp = params["w1"].shape[1]
    if batch_tile is None:
        batch_tile = _default_batch_tile(B, S)
    assert B % batch_tile == 0
    n_tiles = B // batch_tile
    rows = batch_tile * S
    mlp_chunk = min(Hmlp, 512)

    # Fold batch into rows; all reshapes/casts below are cheap wrapper-side XLA.
    xr = x.reshape(B * S, D)
    # Head-blocked, bf16 q/k/v weights: (D_in, D_out) -> (H, D, hd).
    def head_w(w):
        return w.reshape(D, num_heads, head_dim).transpose(1, 0, 2).astype(jnp.bfloat16)
    def head_b(b):
        return b.reshape(num_heads, 1, head_dim).astype(jnp.float32)
    wq_h, wk_h, wv_h = head_w(params["wq"]), head_w(params["wk"]), head_w(params["wv"])
    bq_h, bk_h, bv_h = head_b(params["bq"]), head_b(params["bk"]), head_b(params["bv"])
    w1_bf = params["w1"].astype(jnp.bfloat16)
    w2_bf = params["w2"].astype(jnp.bfloat16)

    def full(shape):
        return pl.BlockSpec(shape, lambda i: (0,) * len(shape))

    kernel = functools.partial(
        encoder_kernel, num_heads=num_heads, head_dim=head_dim,
        seq_len=S, batch_tile=batch_tile, mlp_chunk=mlp_chunk)

    flops = (6 * B * S * D * D          # q/k/v projections
             + 4 * B * S * S * D        # scores + attention*V
             + 4 * B * S * D * Hmlp)    # MLP
    transcendentals = B * num_heads * S * S + B * S * Hmlp + 2 * B * S
    bytes_accessed = (2 * B * S * D * 4
                      + B * num_heads * S * S * 4
                      + (3 * D * D + 2 * D * Hmlp) * 2
                      + (7 * D + Hmlp) * 4)

    out, att = pl.pallas_call(
        kernel,
        out_shape=(
            jax.ShapeDtypeStruct((B * S, D), jnp.float32),
            jax.ShapeDtypeStruct((B, num_heads, S, S), jnp.float32),
        ),
        grid_spec=pltpu.PrefetchScalarGridSpec(
            num_scalar_prefetch=0,
            grid=(n_tiles,),
            in_specs=[
                pl.BlockSpec((rows, D), lambda i: (i, 0)),           # x rows
                full((1, D)), full((1, D)),                          # ln1 gamma/beta
                full((num_heads, D, head_dim)), full((num_heads, 1, head_dim)),  # wq,bq
                full((num_heads, D, head_dim)), full((num_heads, 1, head_dim)),  # wk,bk
                full((num_heads, D, head_dim)), full((num_heads, 1, head_dim)),  # wv,bv
                full((1, D)), full((1, D)),                          # ln2 gamma/beta
                full((D, Hmlp)), full((1, Hmlp)),                    # mlp w1, b1
                full((Hmlp, D)), full((1, D)),                       # mlp w2, b2
            ],
            out_specs=[
                pl.BlockSpec((rows, D), lambda i: (i, 0)),
                pl.BlockSpec((batch_tile, num_heads, S, S),
                             lambda i: (i, 0, 0, 0)),
            ],
            scratch_shapes=[pltpu.VMEM((rows, D), jnp.float32)],
        ),
        compiler_params=pltpu.CompilerParams(
            dimension_semantics=("parallel",),
            vmem_limit_bytes=_vmem_limit_bytes(rows, D, Hmlp, num_heads,
                                               batch_tile, S, mlp_chunk),
        ),
        cost_estimate=pl.CostEstimate(
            flops=flops,
            transcendentals=transcendentals,
            bytes_accessed=bytes_accessed,
        ),
    )(
        xr,
        params["g1"], params["b1"],
        wq_h, bq_h,
        wk_h, bk_h,
        wv_h, bv_h,
        params["g2"], params["b2"],
        w1_bf, params["bb1"],
        w2_bf, params["bb2"],
    )
    return out.reshape(B, S, D), att


def init_params(key, latent_dim, mlp_hidden_dim):
    """Deterministic init mimicking PyTorch defaults (uniform Kaiming-style for
    Linear, ones/zeros for LayerNorm). Linear weights are stored pre-transposed
    as (in, out) so the math is z @ W + b == z @ W_pt.T + b."""
    def linear(k, fan_in, fan_out):
        kw, kb = jax.random.split(k)
        bound = 1.0 / math.sqrt(fan_in)
        w_pt = jax.random.uniform(kw, (fan_out, fan_in), jnp.float32, -bound, bound)
        b = jax.random.uniform(kb, (1, fan_out), jnp.float32, -bound, bound)
        return w_pt.T, b  # (in, out), (1, out)

    ks = jax.random.split(key, 5)
    wq, bq = linear(ks[0], latent_dim, latent_dim)
    wk, bk = linear(ks[1], latent_dim, latent_dim)
    wv, bv = linear(ks[2], latent_dim, latent_dim)
    w1, bb1 = linear(ks[3], latent_dim, mlp_hidden_dim)
    w2, bb2 = linear(ks[4], mlp_hidden_dim, latent_dim)
    return dict(
        g1=jnp.ones((1, latent_dim), jnp.float32),
        b1=jnp.zeros((1, latent_dim), jnp.float32),
        wq=wq, bq=bq, wk=wk, bk=bk, wv=wv, bv=bv,
        g2=jnp.ones((1, latent_dim), jnp.float32),
        b2=jnp.zeros((1, latent_dim), jnp.float32),
        w1=w1, bb1=bb1, w2=w2, bb2=bb2,
    )


def _reference(x, params, num_heads):
    """Pure-JAX f32 reference of the PyTorch forward pass (eval mode)."""
    B, S, D = x.shape
    hd = D // num_heads
    eps = 1e-5

    def ln(v, g, b):
        mu = v.mean(-1, keepdims=True)
        var = ((v - mu) ** 2).mean(-1, keepdims=True)
        return (v - mu) / jnp.sqrt(var + eps) * g[0] + b[0]

    z = ln(x, params["g1"], params["b1"])
    q = z @ params["wq"] + params["bq"][0]
    k = z @ params["wk"] + params["bk"][0]
    v = z @ params["wv"] + params["bv"][0]

    def split(t):
        return t.reshape(B, S, num_heads, hd).transpose(0, 2, 1, 3)

    qh, kh, vh = split(q), split(k), split(v)
    s = jnp.einsum('bhqd,bhkd->bhqk', qh, kh) / math.sqrt(hd)
    att = jax.nn.softmax(s, axis=-1)
    o = jnp.einsum('bhqk,bhkd->bhqd', att, vh)
    o = o.transpose(0, 2, 1, 3).reshape(B, S, D)
    x1 = x + o
    z2 = ln(x1, params["g2"], params["b2"])
    h1 = z2 @ params["w1"] + params["bb1"][0]
    h1 = 0.5 * h1 * (1.0 + lax.erf(h1 / math.sqrt(2.0)))
    h2 = h1 @ params["w2"] + params["bb2"][0]
    return x1 + h2, att


if __name__ == "__main__":
    # Small shapes consistent with the module: B=2, seq=8, latent=32, heads=4, mlp=64.
    B, S, D, H, HMLP = 2, 8, 32, 4, 64
    key = jax.random.PRNGKey(0)
    kx, kp = jax.random.split(key)
    x = jax.random.normal(kx, (B, S, D), dtype=jnp.float32)
    params = init_params(kp, D, HMLP)

    out, att = tf_encoder_cls(x, params, num_heads=H)
    jax.block_until_ready((out, att))
    assert out.shape == (B, S, D) and att.shape == (B, H, S, S)

    # Correctness guard (generous tolerance: bf16 MXU operands vs f32 reference).
    out_ref, att_ref = _reference(x, params, H)
    assert jnp.allclose(out, out_ref, atol=6e-2, rtol=6e-2), \
        float(jnp.max(jnp.abs(out - out_ref)))
    assert jnp.allclose(att, att_ref, atol=2e-2, rtol=2e-2), \
        float(jnp.max(jnp.abs(att - att_ref)))
    print("KERNEL_OK")
</pallas_src>

<mosaic_0001>
module attributes {stable_mosaic.version = 11 : i64} {
  func.func @encoder_kernel(%arg0: i32, %arg1: memref<8x32xf32, #tpu.memory_space<vmem>>, %arg2: memref<1x32xf32, #tpu.memory_space<vmem>>, %arg3: memref<1x32xf32, #tpu.memory_space<vmem>>, %arg4: memref<4x32x8xbf16, #tpu.memory_space<vmem>>, %arg5: memref<4x1x8xf32, #tpu.memory_space<vmem>>, %arg6: memref<4x32x8xbf16, #tpu.memory_space<vmem>>, %arg7: memref<4x1x8xf32, #tpu.memory_space<vmem>>, %arg8: memref<4x32x8xbf16, #tpu.memory_space<vmem>>, %arg9: memref<4x1x8xf32, #tpu.memory_space<vmem>>, %arg10: memref<1x32xf32, #tpu.memory_space<vmem>>, %arg11: memref<1x32xf32, #tpu.memory_space<vmem>>, %arg12: memref<32x64xbf16, #tpu.memory_space<vmem>>, %arg13: memref<1x64xf32, #tpu.memory_space<vmem>>, %arg14: memref<64x32xbf16, #tpu.memory_space<vmem>>, %arg15: memref<1x32xf32, #tpu.memory_space<vmem>>, %arg16: memref<8x32xf32, #tpu.memory_space<vmem>>, %arg17: memref<1x4x8x8xf32, #tpu.memory_space<vmem>>, %arg18: memref<8x32xf32, #tpu.memory_space<vmem>>) attributes {dimension_semantics = [#tpu.dimension_semantics<parallel>], iteration_bounds = array<i64: 2>, scalar_prefetch = 0 : i64, scratch_operands = 1 : i64, tpu.core_type = #tpu.core_type<tc>, window_params = [{transform_indices = @transform_0, window_bounds = array<i64: 8, 32>}, {pipeline_mode = #tpu.pipeline_mode<synchronous>, transform_indices = @transform_1, window_bounds = array<i64: 1, 32>}, {pipeline_mode = #tpu.pipeline_mode<synchronous>, transform_indices = @transform_2, window_bounds = array<i64: 1, 32>}, {pipeline_mode = #tpu.pipeline_mode<synchronous>, transform_indices = @transform_3, window_bounds = array<i64: 4, 32, 8>}, {pipeline_mode = #tpu.pipeline_mode<synchronous>, transform_indices = @transform_4, window_bounds = array<i64: 4, 1, 8>}, {pipeline_mode = #tpu.pipeline_mode<synchronous>, transform_indices = @transform_5, window_bounds = array<i64: 4, 32, 8>}, {pipeline_mode = #tpu.pipeline_mode<synchronous>, transform_indices = @transform_6, window_bounds = array<i64: 4, 1, 8>}, {pipeline_mode = #tpu.pipeline_mode<synchronous>, transform_indices = @transform_7, window_bounds = array<i64: 4, 32, 8>}, {pipeline_mode = #tpu.pipeline_mode<synchronous>, transform_indices = @transform_8, window_bounds = array<i64: 4, 1, 8>}, {pipeline_mode = #tpu.pipeline_mode<synchronous>, transform_indices = @transform_9, window_bounds = array<i64: 1, 32>}, {pipeline_mode = #tpu.pipeline_mode<synchronous>, transform_indices = @transform_10, window_bounds = array<i64: 1, 32>}, {pipeline_mode = #tpu.pipeline_mode<synchronous>, transform_indices = @transform_11, window_bounds = array<i64: 32, 64>}, {pipeline_mode = #tpu.pipeline_mode<synchronous>, transform_indices = @transform_12, window_bounds = array<i64: 1, 64>}, {pipeline_mode = #tpu.pipeline_mode<synchronous>, transform_indices = @transform_13, window_bounds = array<i64: 64, 32>}, {pipeline_mode = #tpu.pipeline_mode<synchronous>, transform_indices = @transform_14, window_bounds = array<i64: 1, 32>}, {transform_indices = @transform_15, window_bounds = array<i64: 8, 32>}, {transform_indices = @transform_16, window_bounds = array<i64: 1, 4, 8, 8>}]} {
    %c0 = arith.constant 0 : index
    %c0_0 = arith.constant 0 : index
    %0 = vector.load %arg1[%c0, %c0_0] : memref<8x32xf32, #tpu.memory_space<vmem>>, vector<8x32xf32>
    %cst = arith.constant dense<0.000000e+00> : vector<8xf32>
    %1 = vector.multi_reduction <add>, %0, %cst [1] : vector<8x32xf32> to vector<8xf32>
    %2 = vector.shape_cast %1 : vector<8xf32> to vector<8x1xf32>
    %cst_1 = arith.constant 3.200000e+01 : f32
    %3 = vector.broadcast %cst_1 : f32 to vector<8x1xf32>
    %4 = arith.divf %2, %3 : vector<8x1xf32>
    %5 = vector.broadcast %4 : vector<8x1xf32> to vector<8x32xf32>
    %6 = arith.subf %0, %5 : vector<8x32xf32>
    %7 = arith.mulf %6, %6 : vector<8x32xf32>
    %cst_2 = arith.constant dense<0.000000e+00> : vector<8xf32>
    %8 = vector.multi_reduction <add>, %7, %cst_2 [1] : vector<8x32xf32> to vector<8xf32>
    %9 = vector.shape_cast %8 : vector<8xf32> to vector<8x1xf32>
    %cst_3 = arith.constant 3.200000e+01 : f32
    %10 = vector.broadcast %cst_3 : f32 to vector<8x1xf32>
    %11 = arith.divf %9, %10 : vector<8x1xf32>
    %12 = vector.broadcast %4 : vector<8x1xf32> to vector<8x32xf32>
    %13 = arith.subf %0, %12 : vector<8x32xf32>
    %cst_4 = arith.constant 9.99999974E-6 : f32
    %14 = vector.broadcast %cst_4 : f32 to vector<8x1xf32>
    %15 = arith.addf %11, %14 : vector<8x1xf32>
    %16 = math.rsqrt %15 : vector<8x1xf32>
    %17 = vector.broadcast %16 : vector<8x1xf32> to vector<8x32xf32>
    %18 = arith.mulf %13, %17 : vector<8x32xf32>
    %c0_5 = arith.constant 0 : index
    %c0_6 = arith.constant 0 : index
    %19 = vector.load %arg2[%c0_5, %c0_6] : memref<1x32xf32, #tpu.memory_space<vmem>>, vector<1x32xf32>
    %20 = vector.broadcast %19 : vector<1x32xf32> to vector<8x32xf32>
    %21 = arith.mulf %18, %20 : vector<8x32xf32>
    %c0_7 = arith.constant 0 : index
    %c0_8 = arith.constant 0 : index
    %22 = vector.load %arg3[%c0_7, %c0_8] : memref<1x32xf32, #tpu.memory_space<vmem>>, vector<1x32xf32>
    %23 = vector.broadcast %22 : vector<1x32xf32> to vector<8x32xf32>
    %24 = arith.addf %21, %23 : vector<8x32xf32>
    %25 = arith.truncf %24 : vector<8x32xf32> to vector<8x32xbf16>
    %c0_9 = arith.constant 0 : index
    %c0_10 = arith.constant 0 : index
    %c0_11 = arith.constant 0 : index
    %26 = vector.load %arg4[%c0_9, %c0_10, %c0_11] : memref<4x32x8xbf16, #tpu.memory_space<vmem>>, vector<1x32x8xbf16>
    %27 = vector.shape_cast %26 : vector<1x32x8xbf16> to vector<32x8xbf16>
    %cst_12 = arith.constant dense<0.000000e+00> : vector<8x8xf32>
    %28 = tpu.matmul %25, %27, %cst_12 {dimension_numbers = #tpu.dot_dimension_numbers<[1], [0], [0], [1], [0, 0, 1, 1], [], []>} : vector<8x32xbf16>, vector<32x8xbf16>, vector<8x8xf32> -> vector<8x8xf32>
    %c0_13 = arith.constant 0 : index
    %c0_14 = arith.constant 0 : index
    %c0_15 = arith.constant 0 : index
    %29 = vector.load %arg5[%c0_13, %c0_14, %c0_15] : memref<4x1x8xf32, #tpu.memory_space<vmem>>, vector<1x1x8xf32>
    %30 = vector.shape_cast %29 : vector<1x1x8xf32> to vector<1x8xf32>
    %31 = vector.broadcast %30 : vector<1x8xf32> to vector<8x8xf32>
    %32 = arith.addf %28, %31 : vector<8x8xf32>
    %c0_16 = arith.constant 0 : index
    %c0_17 = arith.constant 0 : index
    %c0_18 = arith.constant 0 : index
    %33 = vector.load %arg6[%c0_16, %c0_17, %c0_18] : memref<4x32x8xbf16, #tpu.memory_space<vmem>>, vector<1x32x8xbf16>
    %34 = vector.shape_cast %33 : vector<1x32x8xbf16> to vector<32x8xbf16>
    %cst_19 = arith.constant dense<0.000000e+00> : vector<8x8xf32>
    %35 = tpu.matmul %25, %34, %cst_19 {dimension_numbers = #tpu.dot_dimension_numbers<[1], [0], [0], [1], [0, 0, 1, 1], [], []>} : vector<8x32xbf16>, vector<32x8xbf16>, vector<8x8xf32> -> vector<8x8xf32>
    %c0_20 = arith.constant 0 : index
    %c0_21 = arith.constant 0 : index
    %c0_22 = arith.constant 0 : index
    %36 = vector.load %arg7[%c0_20, %c0_21, %c0_22] : memref<4x1x8xf32, #tpu.memory_space<vmem>>, vector<1x1x8xf32>
    %37 = vector.shape_cast %36 : vector<1x1x8xf32> to vector<1x8xf32>
    %38 = vector.broadcast %37 : vector<1x8xf32> to vector<8x8xf32>
    %39 = arith.addf %35, %38 : vector<8x8xf32>
    %c0_23 = arith.constant 0 : index
    %c0_24 = arith.constant 0 : index
    %c0_25 = arith.constant 0 : index
    %40 = vector.load %arg8[%c0_23, %c0_24, %c0_25] : memref<4x32x8xbf16, #tpu.memory_space<vmem>>, vector<1x32x8xbf16>
    %41 = vector.shape_cast %40 : vector<1x32x8xbf16> to vector<32x8xbf16>
    %cst_26 = arith.constant dense<0.000000e+00> : vector<8x8xf32>
    %42 = tpu.matmul %25, %41, %cst_26 {dimension_numbers = #tpu.dot_dimension_numbers<[1], [0], [0], [1], [0, 0, 1, 1], [], []>} : vector<8x32xbf16>, vector<32x8xbf16>, vector<8x8xf32> -> vector<8x8xf32>
    %c0_27 = arith.constant 0 : index
    %c0_28 = arith.constant 0 : index
    %c0_29 = arith.constant 0 : index
    %43 = vector.load %arg9[%c0_27, %c0_28, %c0_29] : memref<4x1x8xf32, #tpu.memory_space<vmem>>, vector<1x1x8xf32>
    %44 = vector.shape_cast %43 : vector<1x1x8xf32> to vector<1x8xf32>
    %45 = vector.broadcast %44 : vector<1x8xf32> to vector<8x8xf32>
    %46 = arith.addf %42, %45 : vector<8x8xf32>
    %47 = vector.shape_cast %32 : vector<8x8xf32> to vector<1x8x8xf32>
    %48 = arith.truncf %47 : vector<1x8x8xf32> to vector<1x8x8xbf16>
    %49 = vector.shape_cast %39 : vector<8x8xf32> to vector<1x8x8xf32>
    %50 = arith.truncf %49 : vector<1x8x8xf32> to vector<1x8x8xbf16>
    %51 = vector.shape_cast %46 : vector<8x8xf32> to vector<1x8x8xf32>
    %52 = arith.truncf %51 : vector<1x8x8xf32> to vector<1x8x8xbf16>
    "tpu.trace_start"() <{level = 10 : i32, message = "bqd,bkd->bqk"}> : () -> ()
    %cst_30 = arith.constant dense<0.000000e+00> : vector<1x8x8xf32>
    %53 = tpu.matmul %48, %50, %cst_30 {dimension_numbers = #tpu.dot_dimension_numbers<[2], [2], [1], [1], [0, 0, 0, 1, 1, 1], [0], [0]>} : vector<1x8x8xbf16>, vector<1x8x8xbf16>, vector<1x8x8xf32> -> vector<1x8x8xf32>
    "tpu.trace_stop"() : () -> ()
    %cst_31 = arith.constant 0.353553385 : f32
    %54 = vector.broadcast %cst_31 : f32 to vector<1x8x8xf32>
    %55 = arith.mulf %53, %54 : vector<1x8x8xf32>
    %cst_32 = arith.constant dense<0xFF800000> : vector<1x8xf32>
    %56 = vector.multi_reduction <maximumf>, %55, %cst_32 [2] : vector<1x8x8xf32> to vector<1x8xf32>
    %57 = vector.shape_cast %56 : vector<1x8xf32> to vector<1x8x1xf32>
    %58 = vector.broadcast %57 : vector<1x8x1xf32> to vector<1x8x8xf32>
    %59 = arith.subf %55, %58 : vector<1x8x8xf32>
    %60 = math.exp %59 : vector<1x8x8xf32>
    %cst_33 = arith.constant dense<0.000000e+00> : vector<1x8xf32>
    %61 = vector.multi_reduction <add>, %60, %cst_33 [2] : vector<1x8x8xf32> to vector<1x8xf32>
    %62 = vector.shape_cast %61 : vector<1x8xf32> to vector<1x8x1xf32>
    %63 = vector.broadcast %62 : vector<1x8x1xf32> to vector<1x8x8xf32>
    %64 = arith.divf %60, %63 : vector<1x8x8xf32>
    %c0_34 = arith.constant 0 : index
    %c0_35 = arith.constant 0 : index
    %c0_36 = arith.constant 0 : index
    %c0_37 = arith.constant 0 : index
    %65 = vector.load %arg17[%c0_34, %c0_35, %c0_36, %c0_37] : memref<1x4x8x8xf32, #tpu.memory_space<vmem>>, vector<1x1x8x8xf32>
    %66 = vector.shape_cast %65 : vector<1x1x8x8xf32> to vector<1x8x8xf32>
    %67 = vector.shape_cast %64 : vector<1x8x8xf32> to vector<1x1x8x8xf32>
    tpu.vector_store %arg17[%c0_34, %c0_35, %c0_36, %c0_37], %67 {strides = array<i32>} : memref<1x4x8x8xf32, #tpu.memory_space<vmem>>, vector<1x1x8x8xf32>,
    %68 = arith.truncf %64 : vector<1x8x8xf32> to vector<1x8x8xbf16>
    "tpu.trace_start"() <{level = 10 : i32, message = "bqk,bkd->bqd"}> : () -> ()
    %cst_38 = arith.constant dense<0.000000e+00> : vector<1x8x8xf32>
    %69 = tpu.matmul %68, %52, %cst_38 {dimension_numbers = #tpu.dot_dimension_numbers<[2], [1], [1], [2], [0, 0, 0, 1, 1, 2], [0], [0]>} : vector<1x8x8xbf16>, vector<1x8x8xbf16>, vector<1x8x8xf32> -> vector<1x8x8xf32>
    "tpu.trace_stop"() : () -> ()
    %70 = vector.shape_cast %69 : vector<1x8x8xf32> to vector<8x8xf32>
    %c0_39 = arith.constant 0 : index
    %c0_40 = arith.constant 0 : index
    %71 = vector.load %arg18[%c0_39, %c0_40] : memref<8x32xf32, #tpu.memory_space<vmem>>, vector<8x8xf32>
    tpu.vector_store %arg18[%c0_39, %c0_40], %70 {strides = array<i32>} : memref<8x32xf32, #tpu.memory_space<vmem>>, vector<8x8xf32>,
    %c1 = arith.constant 1 : index
    %c0_41 = arith.constant 0 : index
    %c0_42 = arith.constant 0 : index
    %72 = vector.load %arg4[%c1, %c0_41, %c0_42] : memref<4x32x8xbf16, #tpu.memory_space<vmem>>, vector<1x32x8xbf16>
    %73 = vector.shape_cast %72 : vector<1x32x8xbf16> to vector<32x8xbf16>
    %cst_43 = arith.constant dense<0.000000e+00> : vector<8x8xf32>
    %74 = tpu.matmul %25, %73, %cst_43 {dimension_numbers = #tpu.dot_dimension_numbers<[1], [0], [0], [1], [0, 0, 1, 1], [], []>} : vector<8x32xbf16>, vector<32x8xbf16>, vector<8x8xf32> -> vector<8x8xf32>
    %c1_44 = arith.constant 1 : index
    %c0_45 = arith.constant 0 : index
    %c0_46 = arith.constant 0 : index
    %75 = vector.load %arg5[%c1_44, %c0_45, %c0_46] : memref<4x1x8xf32, #tpu.memory_space<vmem>>, vector<1x1x8xf32>
    %76 = vector.shape_cast %75 : vector<1x1x8xf32> to vector<1x8xf32>
    %77 = vector.broadcast %76 : vector<1x8xf32> to vector<8x8xf32>
    %78 = arith.addf %74, %77 : vector<8x8xf32>
    %c1_47 = arith.constant 1 : index
    %c0_48 = arith.constant 0 : index
    %c0_49 = arith.constant 0 : index
    %79 = vector.load %arg6[%c1_47, %c0_48, %c0_49] : memref<4x32x8xbf16, #tpu.memory_space<vmem>>, vector<1x32x8xbf16>
    %80 = vector.shape_cast %79 : vector<1x32x8xbf16> to vector<32x8xbf16>
    %cst_50 = arith.constant dense<0.000000e+00> : vector<8x8xf32>
    %81 = tpu.matmul %25, %80, %cst_50 {dimension_numbers = #tpu.dot_dimension_numbers<[1], [0], [0], [1], [0, 0, 1, 1], [], []>} : vector<8x32xbf16>, vector<32x8xbf16>, vector<8x8xf32> -> vector<8x8xf32>
    %c1_51 = arith.constant 1 : index
    %c0_52 = arith.constant 0 : index
    %c0_53 = arith.constant 0 : index
    %82 = vector.load %arg7[%c1_51, %c0_52, %c0_53] : memref<4x1x8xf32, #tpu.memory_space<vmem>>, vector<1x1x8xf32>
    %83 = vector.shape_cast %82 : vector<1x1x8xf32> to vector<1x8xf32>
    %84 = vector.broadcast %83 : vector<1x8xf32> to vector<8x8xf32>
    %85 = arith.addf %81, %84 : vector<8x8xf32>
    %c1_54 = arith.constant 1 : index
    %c0_55 = arith.constant 0 : index
    %c0_56 = arith.constant 0 : index
    %86 = vector.load %arg8[%c1_54, %c0_55, %c0_56] : memref<4x32x8xbf16, #tpu.memory_space<vmem>>, vector<1x32x8xbf16>
    %87 = vector.shape_cast %86 : vector<1x32x8xbf16> to vector<32x8xbf16>
    %cst_57 = arith.constant dense<0.000000e+00> : vector<8x8xf32>
    %88 = tpu.matmul %25, %87, %cst_57 {dimension_numbers = #tpu.dot_dimension_numbers<[1], [0], [0], [1], [0, 0, 1, 1], [], []>} : vector<8x32xbf16>, vector<32x8xbf16>, vector<8x8xf32> -> vector<8x8xf32>
    %c1_58 = arith.constant 1 : index
    %c0_59 = arith.constant 0 : index
    %c0_60 = arith.constant 0 : index
    %89 = vector.load %arg9[%c1_58, %c0_59, %c0_60] : memref<4x1x8xf32, #tpu.memory_space<vmem>>, vector<1x1x8xf32>
    %90 = vector.shape_cast %89 : vector<1x1x8xf32> to vector<1x8xf32>
    %91 = vector.broadcast %90 : vector<1x8xf32> to vector<8x8xf32>
    %92 = arith.addf %88, %91 : vector<8x8xf32>
    %93 = vector.shape_cast %78 : vector<8x8xf32> to vector<1x8x8xf32>
    %94 = arith.truncf %93 : vector<1x8x8xf32> to vector<1x8x8xbf16>
    %95 = vector.shape_cast %85 : vector<8x8xf32> to vector<1x8x8xf32>
    %96 = arith.truncf %95 : vector<1x8x8xf32> to vector<1x8x8xbf16>
    %97 = vector.shape_cast %92 : vector<8x8xf32> to vector<1x8x8xf32>
    %98 = arith.truncf %97 : vector<1x8x8xf32> to vector<1x8x8xbf16>
    "tpu.trace_start"() <{level = 10 : i32, message = "bqd,bkd->bqk"}> : () -> ()
    %cst_61 = arith.constant dense<0.000000e+00> : vector<1x8x8xf32>
    %99 = tpu.matmul %94, %96, %cst_61 {dimension_numbers = #tpu.dot_dimension_numbers<[2], [2], [1], [1], [0, 0, 0, 1, 1, 1], [0], [0]>} : vector<1x8x8xbf16>, vector<1x8x8xbf16>, vector<1x8x8xf32> -> vector<1x8x8xf32>
    "tpu.trace_stop"() : () -> ()
    %cst_62 = arith.constant 0.353553385 : f32
    %100 = vector.broadcast %cst_62 : f32 to vector<1x8x8xf32>
    %101 = arith.mulf %99, %100 : vector<1x8x8xf32>
    %cst_63 = arith.constant dense<0xFF800000> : vector<1x8xf32>
    %102 = vector.multi_reduction <maximumf>, %101, %cst_63 [2] : vector<1x8x8xf32> to vector<1x8xf32>
    %103 = vector.shape_cast %102 : vector<1x8xf32> to vector<1x8x1xf32>
    %104 = vector.broadcast %103 : vector<1x8x1xf32> to vector<1x8x8xf32>
    %105 = arith.subf %101, %104 : vector<1x8x8xf32>
    %106 = math.exp %105 : vector<1x8x8xf32>
    %cst_64 = arith.constant dense<0.000000e+00> : vector<1x8xf32>
    %107 = vector.multi_reduction <add>, %106, %cst_64 [2] : vector<1x8x8xf32> to vector<1x8xf32>
    %108 = vector.shape_cast %107 : vector<1x8xf32> to vector<1x8x1xf32>
    %109 = vector.broadcast %108 : vector<1x8x1xf32> to vector<1x8x8xf32>
    %110 = arith.divf %106, %109 : vector<1x8x8xf32>
    %c0_65 = arith.constant 0 : index
    %c1_66 = arith.constant 1 : index
    %c0_67 = arith.constant 0 : index
    %c0_68 = arith.constant 0 : index
    %111 = vector.load %arg17[%c0_65, %c1_66, %c0_67, %c0_68] : memref<1x4x8x8xf32, #tpu.memory_space<vmem>>, vector<1x1x8x8xf32>
    %112 = vector.shape_cast %111 : vector<1x1x8x8xf32> to vector<1x8x8xf32>
    %113 = vector.shape_cast %110 : vector<1x8x8xf32> to vector<1x1x8x8xf32>
    tpu.vector_store %arg17[%c0_65, %c1_66, %c0_67, %c0_68], %113 {strides = array<i32>} : memref<1x4x8x8xf32, #tpu.memory_space<vmem>>, vector<1x1x8x8xf32>,
    %114 = arith.truncf %110 : vector<1x8x8xf32> to vector<1x8x8xbf16>
    "tpu.trace_start"() <{level = 10 : i32, message = "bqk,bkd->bqd"}> : () -> ()
    %cst_69 = arith.constant dense<0.000000e+00> : vector<1x8x8xf32>
    %115 = tpu.matmul %114, %98, %cst_69 {dimension_numbers = #tpu.dot_dimension_numbers<[2], [1], [1], [2], [0, 0, 0, 1, 1, 2], [0], [0]>} : vector<1x8x8xbf16>, vector<1x8x8xbf16>, vector<1x8x8xf32> -> vector<1x8x8xf32>
    "tpu.trace_stop"() : () -> ()
    %116 = vector.shape_cast %115 : vector<1x8x8xf32> to vector<8x8xf32>
    %c0_70 = arith.constant 0 : index
    %c8 = arith.constant 8 : index
    %117 = vector.load %arg18[%c0_70, %c8] : memref<8x32xf32, #tpu.memory_space<vmem>>, vector<8x8xf32>
    tpu.vector_store %arg18[%c0_70, %c8], %116 {strides = array<i32>} : memref<8x32xf32, #tpu.memory_space<vmem>>, vector<8x8xf32>,
    %c2 = arith.constant 2 : index
    %c0_71 = arith.constant 0 : index
    %c0_72 = arith.constant 0 : index
    %118 = vector.load %arg4[%c2, %c0_71, %c0_72] : memref<4x32x8xbf16, #tpu.memory_space<vmem>>, vector<1x32x8xbf16>
    %119 = vector.shape_cast %118 : vector<1x32x8xbf16> to vector<32x8xbf16>
    %cst_73 = arith.constant dense<0.000000e+00> : vector<8x8xf32>
    %120 = tpu.matmul %25, %119, %cst_73 {dimension_numbers = #tpu.dot_dimension_numbers<[1], [0], [0], [1], [0, 0, 1, 1], [], []>} : vector<8x32xbf16>, vector<32x8xbf16>, vector<8x8xf32> -> vector<8x8xf32>
    %c2_74 = arith.constant 2 : index
    %c0_75 = arith.constant 0 : index
    %c0_76 = arith.constant 0 : index
    %121 = vector.load %arg5[%c2_74, %c0_75, %c0_76] : memref<4x1x8xf32, #tpu.memory_space<vmem>>, vector<1x1x8xf32>
    %122 = vector.shape_cast %121 : vector<1x1x8xf32> to vector<1x8xf32>
    %123 = vector.broadcast %122 : vector<1x8xf32> to vector<8x8xf32>
    %124 = arith.addf %120, %123 : vector<8x8xf32>
    %c2_77 = arith.constant 2 : index
    %c0_78 = arith.constant 0 : index
    %c0_79 = arith.constant 0 : index
    %125 = vector.load %arg6[%c2_77, %c0_78, %c0_79] : memref<4x32x8xbf16, #tpu.memory_space<vmem>>, vector<1x32x8xbf16>
    %126 = vector.shape_cast %125 : vector<1x32x8xbf16> to vector<32x8xbf16>
    %cst_80 = arith.constant dense<0.000000e+00> : vector<8x8xf32>
    %127 = tpu.matmul %25, %126, %cst_80 {dimension_numbers = #tpu.dot_dimension_numbers<[1], [0], [0], [1], [0, 0, 1, 1], [], []>} : vector<8x32xbf16>, vector<32x8xbf16>, vector<8x8xf32> -> vector<8x8xf32>
    %c2_81 = arith.constant 2 : index
    %c0_82 = arith.constant 0 : index
    %c0_83 = arith.constant 0 : index
    %128 = vector.load %arg7[%c2_81, %c0_82, %c0_83] : memref<4x1x8xf32, #tpu.memory_space<vmem>>, vector<1x1x8xf32>
    %129 = vector.shape_cast %128 : vector<1x1x8xf32> to vector<1x8xf32>
    %130 = vector.broadcast %129 : vector<1x8xf32> to vector<8x8xf32>
    %131 = arith.addf %127, %130 : vector<8x8xf32>
    %c2_84 = arith.constant 2 : index
    %c0_85 = arith.constant 0 : index
    %c0_86 = arith.constant 0 : index
    %132 = vector.load %arg8[%c2_84, %c0_85, %c0_86] : memref<4x32x8xbf16, #tpu.memory_space<vmem>>, vector<1x32x8xbf16>
    %133 = vector.shape_cast %132 : vector<1x32x8xbf16> to vector<32x8xbf16>
    %cst_87 = arith.constant dense<0.000000e+00> : vector<8x8xf32>
    %134 = tpu.matmul %25, %133, %cst_87 {dimension_numbers = #tpu.dot_dimension_numbers<[1], [0], [0], [1], [0, 0, 1, 1], [], []>} : vector<8x32xbf16>, vector<32x8xbf16>, vector<8x8xf32> -> vector<8x8xf32>
    %c2_88 = arith.constant 2 : index
    %c0_89 = arith.constant 0 : index
    %c0_90 = arith.constant 0 : index
    %135 = vector.load %arg9[%c2_88, %c0_89, %c0_90] : memref<4x1x8xf32, #tpu.memory_space<vmem>>, vector<1x1x8xf32>
    %136 = vector.shape_cast %135 : vector<1x1x8xf32> to vector<1x8xf32>
    %137 = vector.broadcast %136 : vector<1x8xf32> to vector<8x8xf32>
    %138 = arith.addf %134, %137 : vector<8x8xf32>
    %139 = vector.shape_cast %124 : vector<8x8xf32> to vector<1x8x8xf32>
    %140 = arith.truncf %139 : vector<1x8x8xf32> to vector<1x8x8xbf16>
    %141 = vector.shape_cast %131 : vector<8x8xf32> to vector<1x8x8xf32>
    %142 = arith.truncf %141 : vector<1x8x8xf32> to vector<1x8x8xbf16>
    %143 = vector.shape_cast %138 : vector<8x8xf32> to vector<1x8x8xf32>
    %144 = arith.truncf %143 : vector<1x8x8xf32> to vector<1x8x8xbf16>
    "tpu.trace_start"() <{level = 10 : i32, message = "bqd,bkd->bqk"}> : () -> ()
    %cst_91 = arith.constant dense<0.000000e+00> : vector<1x8x8xf32>
    %145 = tpu.matmul %140, %142, %cst_91 {dimension_numbers = #tpu.dot_dimension_numbers<[2], [2], [1], [1], [0, 0, 0, 1, 1, 1], [0], [0]>} : vector<1x8x8xbf16>, vector<1x8x8xbf16>, vector<1x8x8xf32> -> vector<1x8x8xf32>
    "tpu.trace_stop"() : () -> ()
    %cst_92 = arith.constant 0.353553385 : f32
    %146 = vector.broadcast %cst_92 : f32 to vector<1x8x8xf32>
    %147 = arith.mulf %145, %146 : vector<1x8x8xf32>
    %cst_93 = arith.constant dense<0xFF800000> : vector<1x8xf32>
    %148 = vector.multi_reduction <maximumf>, %147, %cst_93 [2] : vector<1x8x8xf32> to vector<1x8xf32>
    %149 = vector.shape_cast %148 : vector<1x8xf32> to vector<1x8x1xf32>
    %150 = vector.broadcast %149 : vector<1x8x1xf32> to vector<1x8x8xf32>
    %151 = arith.subf %147, %150 : vector<1x8x8xf32>
    %152 = math.exp %151 : vector<1x8x8xf32>
    %cst_94 = arith.constant dense<0.000000e+00> : vector<1x8xf32>
    %153 = vector.multi_reduction <add>, %152, %cst_94 [2] : vector<1x8x8xf32> to vector<1x8xf32>
    %154 = vector.shape_cast %153 : vector<1x8xf32> to vector<1x8x1xf32>
    %155 = vector.broadcast %154 : vector<1x8x1xf32> to vector<1x8x8xf32>
    %156 = arith.divf %152, %155 : vector<1x8x8xf32>
    %c0_95 = arith.constant 0 : index
    %c2_96 = arith.constant 2 : index
    %c0_97 = arith.constant 0 : index
    %c0_98 = arith.constant 0 : index
    %157 = vector.load %arg17[%c0_95, %c2_96, %c0_97, %c0_98] : memref<1x4x8x8xf32, #tpu.memory_space<vmem>>, vector<1x1x8x8xf32>
    %158 = vector.shape_cast %157 : vector<1x1x8x8xf32> to vector<1x8x8xf32>
    %159 = vector.shape_cast %156 : vector<1x8x8xf32> to vector<1x1x8x8xf32>
    tpu.vector_store %arg17[%c0_95, %c2_96, %c0_97, %c0_98], %159 {strides = array<i32>} : memref<1x4x8x8xf32, #tpu.memory_space<vmem>>, vector<1x1x8x8xf32>,
    %160 = arith.truncf %156 : vector<1x8x8xf32> to vector<1x8x8xbf16>
    "tpu.trace_start"() <{level = 10 : i32, message = "bqk,bkd->bqd"}> : () -> ()
    %cst_99 = arith.constant dense<0.000000e+00> : vector<1x8x8xf32>
    %161 = tpu.matmul %160, %144, %cst_99 {dimension_numbers = #tpu.dot_dimension_numbers<[2], [1], [1], [2], [0, 0, 0, 1, 1, 2], [0], [0]>} : vector<1x8x8xbf16>, vector<1x8x8xbf16>, vector<1x8x8xf32> -> vector<1x8x8xf32>
    "tpu.trace_stop"() : () -> ()
    %162 = vector.shape_cast %161 : vector<1x8x8xf32> to vector<8x8xf32>
    %c0_100 = arith.constant 0 : index
    %c16 = arith.constant 16 : index
    %163 = vector.load %arg18[%c0_100, %c16] : memref<8x32xf32, #tpu.memory_space<vmem>>, vector<8x8xf32>
    tpu.vector_store %arg18[%c0_100, %c16], %162 {strides = array<i32>} : memref<8x32xf32, #tpu.memory_space<vmem>>, vector<8x8xf32>,
    %c3 = arith.constant 3 : index
    %c0_101 = arith.constant 0 : index
    %c0_102 = arith.constant 0 : index
    %164 = vector.load %arg4[%c3, %c0_101, %c0_102] : memref<4x32x8xbf16, #tpu.memory_space<vmem>>, vector<1x32x8xbf16>
    %165 = vector.shape_cast %164 : vector<1x32x8xbf16> to vector<32x8xbf16>
    %cst_103 = arith.constant dense<0.000000e+00> : vector<8x8xf32>
    %166 = tpu.matmul %25, %165, %cst_103 {dimension_numbers = #tpu.dot_dimension_numbers<[1], [0], [0], [1], [0, 0, 1, 1], [], []>} : vector<8x32xbf16>, vector<32x8xbf16>, vector<8x8xf32> -> vector<8x8xf32>
    %c3_104 = arith.constant 3 : index
    %c0_105 = arith.constant 0 : index
    %c0_106 = arith.constant 0 : index
    %167 = vector.load %arg5[%c3_104, %c0_105, %c0_106] : memref<4x1x8xf32, #tpu.memory_space<vmem>>, vector<1x1x8xf32>
    %168 = vector.shape_cast %167 : vector<1x1x8xf32> to vector<1x8xf32>
    %169 = vector.broadcast %168 : vector<1x8xf32> to vector<8x8xf32>
    %170 = arith.addf %166, %169 : vector<8x8xf32>
    %c3_107 = arith.constant 3 : index
    %c0_108 = arith.constant 0 : index
    %c0_109 = arith.constant 0 : index
    %171 = vector.load %arg6[%c3_107, %c0_108, %c0_109] : memref<4x32x8xbf16, #tpu.memory_space<vmem>>, vector<1x32x8xbf16>
    %172 = vector.shape_cast %171 : vector<1x32x8xbf16> to vector<32x8xbf16>
    %cst_110 = arith.constant dense<0.000000e+00> : vector<8x8xf32>
    %173 = tpu.matmul %25, %172, %cst_110 {dimension_numbers = #tpu.dot_dimension_numbers<[1], [0], [0], [1], [0, 0, 1, 1], [], []>} : vector<8x32xbf16>, vector<32x8xbf16>, vector<8x8xf32> -> vector<8x8xf32>
    %c3_111 = arith.constant 3 : index
    %c0_112 = arith.constant 0 : index
    %c0_113 = arith.constant 0 : index
    %174 = vector.load %arg7[%c3_111, %c0_112, %c0_113] : memref<4x1x8xf32, #tpu.memory_space<vmem>>, vector<1x1x8xf32>
    %175 = vector.shape_cast %174 : vector<1x1x8xf32> to vector<1x8xf32>
    %176 = vector.broadcast %175 : vector<1x8xf32> to vector<8x8xf32>
    %177 = arith.addf %173, %176 : vector<8x8xf32>
    %c3_114 = arith.constant 3 : index
    %c0_115 = arith.constant 0 : index
    %c0_116 = arith.constant 0 : index
    %178 = vector.load %arg8[%c3_114, %c0_115, %c0_116] : memref<4x32x8xbf16, #tpu.memory_space<vmem>>, vector<1x32x8xbf16>
    %179 = vector.shape_cast %178 : vector<1x32x8xbf16> to vector<32x8xbf16>
    %cst_117 = arith.constant dense<0.000000e+00> : vector<8x8xf32>
    %180 = tpu.matmul %25, %179, %cst_117 {dimension_numbers = #tpu.dot_dimension_numbers<[1], [0], [0], [1], [0, 0, 1, 1], [], []>} : vector<8x32xbf16>, vector<32x8xbf16>, vector<8x8xf32> -> vector<8x8xf32>
    %c3_118 = arith.constant 3 : index
    %c0_119 = arith.constant 0 : index
    %c0_120 = arith.constant 0 : index
    %181 = vector.load %arg9[%c3_118, %c0_119, %c0_120] : memref<4x1x8xf32, #tpu.memory_space<vmem>>, vector<1x1x8xf32>
    %182 = vector.shape_cast %181 : vector<1x1x8xf32> to vector<1x8xf32>
    %183 = vector.broadcast %182 : vector<1x8xf32> to vector<8x8xf32>
    %184 = arith.addf %180, %183 : vector<8x8xf32>
    %185 = vector.shape_cast %170 : vector<8x8xf32> to vector<1x8x8xf32>
    %186 = arith.truncf %185 : vector<1x8x8xf32> to vector<1x8x8xbf16>
    %187 = vector.shape_cast %177 : vector<8x8xf32> to vector<1x8x8xf32>
    %188 = arith.truncf %187 : vector<1x8x8xf32> to vector<1x8x8xbf16>
    %189 = vector.shape_cast %184 : vector<8x8xf32> to vector<1x8x8xf32>
    %190 = arith.truncf %189 : vector<1x8x8xf32> to vector<1x8x8xbf16>
    "tpu.trace_start"() <{level = 10 : i32, message = "bqd,bkd->bqk"}> : () -> ()
    %cst_121 = arith.constant dense<0.000000e+00> : vector<1x8x8xf32>
    %191 = tpu.matmul %186, %188, %cst_121 {dimension_numbers = #tpu.dot_dimension_numbers<[2], [2], [1], [1], [0, 0, 0, 1, 1, 1], [0], [0]>} : vector<1x8x8xbf16>, vector<1x8x8xbf16>, vector<1x8x8xf32> -> vector<1x8x8xf32>
    "tpu.trace_stop"() : () -> ()
    %cst_122 = arith.constant 0.353553385 : f32
    %192 = vector.broadcast %cst_122 : f32 to vector<1x8x8xf32>
    %193 = arith.mulf %191, %192 : vector<1x8x8xf32>
    %cst_123 = arith.constant dense<0xFF800000> : vector<1x8xf32>
    %194 = vector.multi_reduction <maximumf>, %193, %cst_123 [2] : vector<1x8x8xf32> to vector<1x8xf32>
    %195 = vector.shape_cast %194 : vector<1x8xf32> to vector<1x8x1xf32>
    %196 = vector.broadcast %195 : vector<1x8x1xf32> to vector<1x8x8xf32>
    %197 = arith.subf %193, %196 : vector<1x8x8xf32>
    %198 = math.exp %197 : vector<1x8x8xf32>
    %cst_124 = arith.constant dense<0.000000e+00> : vector<1x8xf32>
    %199 = vector.multi_reduction <add>, %198, %cst_124 [2] : vector<1x8x8xf32> to vector<1x8xf32>
    %200 = vector.shape_cast %199 : vector<1x8xf32> to vector<1x8x1xf32>
    %201 = vector.broadcast %200 : vector<1x8x1xf32> to vector<1x8x8xf32>
    %202 = arith.divf %198, %201 : vector<1x8x8xf32>
    %c0_125 = arith.constant 0 : index
    %c3_126 = arith.constant 3 : index
    %c0_127 = arith.constant 0 : index
    %c0_128 = arith.constant 0 : index
    %203 = vector.load %arg17[%c0_125, %c3_126, %c0_127, %c0_128] : memref<1x4x8x8xf32, #tpu.memory_space<vmem>>, vector<1x1x8x8xf32>
    %204 = vector.shape_cast %203 : vector<1x1x8x8xf32> to vector<1x8x8xf32>
    %205 = vector.shape_cast %202 : vector<1x8x8xf32> to vector<1x1x8x8xf32>
    tpu.vector_store %arg17[%c0_125, %c3_126, %c0_127, %c0_128], %205 {strides = array<i32>} : memref<1x4x8x8xf32, #tpu.memory_space<vmem>>, vector<1x1x8x8xf32>,
    %206 = arith.truncf %202 : vector<1x8x8xf32> to vector<1x8x8xbf16>
    "tpu.trace_start"() <{level = 10 : i32, message = "bqk,bkd->bqd"}> : () -> ()
    %cst_129 = arith.constant dense<0.000000e+00> : vector<1x8x8xf32>
    %207 = tpu.matmul %206, %190, %cst_129 {dimension_numbers = #tpu.dot_dimension_numbers<[2], [1], [1], [2], [0, 0, 0, 1, 1, 2], [0], [0]>} : vector<1x8x8xbf16>, vector<1x8x8xbf16>, vector<1x8x8xf32> -> vector<1x8x8xf32>
    "tpu.trace_stop"() : () -> ()
    %208 = vector.shape_cast %207 : vector<1x8x8xf32> to vector<8x8xf32>
    %c0_130 = arith.constant 0 : index
    %c24 = arith.constant 24 : index
    %209 = vector.load %arg18[%c0_130, %c24] : memref<8x32xf32, #tpu.memory_space<vmem>>, vector<8x8xf32>
    tpu.vector_store %arg18[%c0_130, %c24], %208 {strides = array<i32>} : memref<8x32xf32, #tpu.memory_space<vmem>>, vector<8x8xf32>,
    %c0_131 = arith.constant 0 : index
    %c0_132 = arith.constant 0 : index
    %210 = vector.load %arg18[%c0_131, %c0_132] : memref<8x32xf32, #tpu.memory_space<vmem>>, vector<8x32xf32>
    %211 = arith.addf %0, %210 : vector<8x32xf32>
    %cst_133 = arith.constant dense<0.000000e+00> : vector<8xf32>
    %212 = vector.multi_reduction <add>, %211, %cst_133 [1] : vector<8x32xf32> to vector<8xf32>
    %213 = vector.shape_cast %212 : vector<8xf32> to vector<8x1xf32>
    %cst_134 = arith.constant 3.200000e+01 : f32
    %214 = vector.broadcast %cst_134 : f32 to vector<8x1xf32>
    %215 = arith.divf %213, %214 : vector<8x1xf32>
    %216 = vector.broadcast %215 : vector<8x1xf32> to vector<8x32xf32>
    %217 = arith.subf %211, %216 : vector<8x32xf32>
    %218 = arith.mulf %217, %217 : vector<8x32xf32>
    %cst_135 = arith.constant dense<0.000000e+00> : vector<8xf32>
    %219 = vector.multi_reduction <add>, %218, %cst_135 [1] : vector<8x32xf32> to vector<8xf32>
    %220 = vector.shape_cast %219 : vector<8xf32> to vector<8x1xf32>
    %cst_136 = arith.constant 3.200000e+01 : f32
    %221 = vector.broadcast %cst_136 : f32 to vector<8x1xf32>
    %222 = arith.divf %220, %221 : vector<8x1xf32>
    %223 = vector.broadcast %215 : vector<8x1xf32> to vector<8x32xf32>
    %224 = arith.subf %211, %223 : vector<8x32xf32>
    %cst_137 = arith.constant 9.99999974E-6 : f32
    %225 = vector.broadcast %cst_137 : f32 to vector<8x1xf32>
    %226 = arith.addf %222, %225 : vector<8x1xf32>
    %227 = math.rsqrt %226 : vector<8x1xf32>
    %228 = vector.broadcast %227 : vector<8x1xf32> to vector<8x32xf32>
    %229 = arith.mulf %224, %228 : vector<8x32xf32>
    %c0_138 = arith.constant 0 : index
    %c0_139 = arith.constant 0 : index
    %230 = vector.load %arg10[%c0_138, %c0_139] : memref<1x32xf32, #tpu.memory_space<vmem>>, vector<1x32xf32>
    %231 = vector.broadcast %230 : vector<1x32xf32> to vector<8x32xf32>
    %232 = arith.mulf %229, %231 : vector<8x32xf32>
    %c0_140 = arith.constant 0 : index
    %c0_141 = arith.constant 0 : index
    %233 = vector.load %arg11[%c0_140, %c0_141] : memref<1x32xf32, #tpu.memory_space<vmem>>, vector<1x32xf32>
    %234 = vector.broadcast %233 : vector<1x32xf32> to vector<8x32xf32>
    %235 = arith.addf %232, %234 : vector<8x32xf32>
    %236 = arith.truncf %235 : vector<8x32xf32> to vector<8x32xbf16>
    %cst_142 = arith.constant 0.000000e+00 : f32
    %237 = vector.broadcast %cst_142 : f32 to vector<8x32xf32>
    %c0_143 = arith.constant 0 : index
    %c0_144 = arith.constant 0 : index
    %238 = vector.load %arg12[%c0_143, %c0_144] : memref<32x64xbf16, #tpu.memory_space<vmem>>, vector<32x64xbf16>
    %cst_145 = arith.constant dense<0.000000e+00> : vector<8x64xf32>
    %239 = tpu.matmul %236, %238, %cst_145 {dimension_numbers = #tpu.dot_dimension_numbers<[1], [0], [0], [1], [0, 0, 1, 1], [], []>} : vector<8x32xbf16>, vector<32x64xbf16>, vector<8x64xf32> -> vector<8x64xf32>
    %c0_146 = arith.constant 0 : index
    %c0_147 = arith.constant 0 : index
    %240 = vector.load %arg13[%c0_146, %c0_147] : memref<1x64xf32, #tpu.memory_space<vmem>>, vector<1x64xf32>
    %241 = vector.broadcast %240 : vector<1x64xf32> to vector<8x64xf32>
    %242 = arith.addf %239, %241 : vector<8x64xf32>
    %cst_148 = arith.constant 5.000000e-01 : f32
    %243 = vector.broadcast %cst_148 : f32 to vector<8x64xf32>
    %244 = arith.mulf %243, %242 : vector<8x64xf32>
    %cst_149 = arith.constant 0.707106769 : f32
    %245 = vector.broadcast %cst_149 : f32 to vector<8x64xf32>
    %246 = arith.mulf %242, %245 : vector<8x64xf32>
    %247 = math.erf %246 : vector<8x64xf32>
    %cst_150 = arith.constant 1.000000e+00 : f32
    %248 = vector.broadcast %cst_150 : f32 to vector<8x64xf32>
    %249 = arith.addf %248, %247 : vector<8x64xf32>
    %250 = arith.mulf %244, %249 : vector<8x64xf32>
    %251 = arith.truncf %250 : vector<8x64xf32> to vector<8x64xbf16>
    %c0_151 = arith.constant 0 : index
    %c0_152 = arith.constant 0 : index
    %252 = vector.load %arg14[%c0_151, %c0_152] : memref<64x32xbf16, #tpu.memory_space<vmem>>, vector<64x32xbf16>
    %cst_153 = arith.constant dense<0.000000e+00> : vector<8x32xf32>
    %253 = tpu.matmul %251, %252, %cst_153 {dimension_numbers = #tpu.dot_dimension_numbers<[1], [0], [0], [1], [0, 0, 1, 1], [], []>} : vector<8x64xbf16>, vector<64x32xbf16>, vector<8x32xf32> -> vector<8x32xf32>
    %254 = arith.addf %237, %253 : vector<8x32xf32>
    %c0_154 = arith.constant 0 : index
    %c0_155 = arith.constant 0 : index
    %255 = vector.load %arg15[%c0_154, %c0_155] : memref<1x32xf32, #tpu.memory_space<vmem>>, vector<1x32xf32>
    %256 = vector.broadcast %255 : vector<1x32xf32> to vector<8x32xf32>
    %257 = arith.addf %254, %256 : vector<8x32xf32>
    %258 = arith.addf %211, %257 : vector<8x32xf32>
    %c0_156 = arith.constant 0 : index
    %c0_157 = arith.constant 0 : index
    %259 = vector.load %arg16[%c0_156, %c0_157] : memref<8x32xf32, #tpu.memory_space<vmem>>, vector<8x32xf32>
    tpu.vector_store %arg16[%c0_156, %c0_157], %258 {strides = array<i32>} : memref<8x32xf32, #tpu.memory_space<vmem>>, vector<8x32xf32>,
    return
  }
  func.func @transform_0(%arg0: i32) -> (i32, i32) {
    %c0_i32 = arith.constant 0 : i32
    %c0_i32_0 = arith.constant 0 : i32
    return %arg0, %c0_i32 : i32, i32
  }
  func.func @transform_1(%arg0: i32) -> (i32, i32) {
    %c0_i32 = arith.constant 0 : i32
    %c0_i32_0 = arith.constant 0 : i32
    %c0_i32_1 = arith.constant 0 : i32
    return %c0_i32, %c0_i32_0 : i32, i32
  }
  func.func @transform_2(%arg0: i32) -> (i32, i32) {
    %c0_i32 = arith.constant 0 : i32
    %c0_i32_0 = arith.constant 0 : i32
    %c0_i32_1 = arith.constant 0 : i32
    return %c0_i32, %c0_i32_0 : i32, i32
  }
  func.func @transform_3(%arg0: i32) -> (i32, i32, i32) {
    %c0_i32 = arith.constant 0 : i32
    %c0_i32_0 = arith.constant 0 : i32
    %c0_i32_1 = arith.constant 0 : i32
    %c0_i32_2 = arith.constant 0 : i32
    return %c0_i32, %c0_i32_0, %c0_i32_1 : i32, i32, i32
  }
  func.func @transform_4(%arg0: i32) -> (i32, i32, i32) {
    %c0_i32 = arith.constant 0 : i32
    %c0_i32_0 = arith.constant 0 : i32
    %c0_i32_1 = arith.constant 0 : i32
    %c0_i32_2 = arith.constant 0 : i32
    return %c0_i32, %c0_i32_0, %c0_i32_1 : i32, i32, i32
  }
  func.func @transform_5(%arg0: i32) -> (i32, i32, i32) {
    %c0_i32 = arith.constant 0 : i32
    %c0_i32_0 = arith.constant 0 : i32
    %c0_i32_1 = arith.constant 0 : i32
    %c0_i32_2 = arith.constant 0 : i32
    return %c0_i32, %c0_i32_0, %c0_i32_1 : i32, i32, i32
  }
  func.func @transform_6(%arg0: i32) -> (i32, i32, i32) {
    %c0_i32 = arith.constant 0 : i32
    %c0_i32_0 = arith.constant 0 : i32
    %c0_i32_1 = arith.constant 0 : i32
    %c0_i32_2 = arith.constant 0 : i32
    return %c0_i32, %c0_i32_0, %c0_i32_1 : i32, i32, i32
  }
  func.func @transform_7(%arg0: i32) -> (i32, i32, i32) {
    %c0_i32 = arith.constant 0 : i32
    %c0_i32_0 = arith.constant 0 : i32
    %c0_i32_1 = arith.constant 0 : i32
    %c0_i32_2 = arith.constant 0 : i32
    return %c0_i32, %c0_i32_0, %c0_i32_1 : i32, i32, i32
  }
  func.func @transform_8(%arg0: i32) -> (i32, i32, i32) {
    %c0_i32 = arith.constant 0 : i32
    %c0_i32_0 = arith.constant 0 : i32
    %c0_i32_1 = arith.constant 0 : i32
    %c0_i32_2 = arith.constant 0 : i32
    return %c0_i32, %c0_i32_0, %c0_i32_1 : i32, i32, i32
  }
  func.func @transform_9(%arg0: i32) -> (i32, i32) {
    %c0_i32 = arith.constant 0 : i32
    %c0_i32_0 = arith.constant 0 : i32
    %c0_i32_1 = arith.constant 0 : i32
    return %c0_i32, %c0_i32_0 : i32, i32
  }
  func.func @transform_10(%arg0: i32) -> (i32, i32) {
    %c0_i32 = arith.constant 0 : i32
    %c0_i32_0 = arith.constant 0 : i32
    %c0_i32_1 = arith.constant 0 : i32
    return %c0_i32, %c0_i32_0 : i32, i32
  }
  func.func @transform_11(%arg0: i32) -> (i32, i32) {
    %c0_i32 = arith.constant 0 : i32
    %c0_i32_0 = arith.constant 0 : i32
    %c0_i32_1 = arith.constant 0 : i32
    return %c0_i32, %c0_i32_0 : i32, i32
  }
  func.func @transform_12(%arg0: i32) -> (i32, i32) {
    %c0_i32 = arith.constant 0 : i32
    %c0_i32_0 = arith.constant 0 : i32
    %c0_i32_1 = arith.constant 0 : i32
    return %c0_i32, %c0_i32_0 : i32, i32
  }
  func.func @transform_13(%arg0: i32) -> (i32, i32) {
    %c0_i32 = arith.constant 0 : i32
    %c0_i32_0 = arith.constant 0 : i32
    %c0_i32_1 = arith.constant 0 : i32
    return %c0_i32, %c0_i32_0 : i32, i32
  }
  func.func @transform_14(%arg0: i32) -> (i32, i32) {
    %c0_i32 = arith.constant 0 : i32
    %c0_i32_0 = arith.constant 0 : i32
    %c0_i32_1 = arith.constant 0 : i32
    return %c0_i32, %c0_i32_0 : i32, i32
  }
  func.func @transform_15(%arg0: i32) -> (i32, i32) {
    %c0_i32 = arith.constant 0 : i32
    %c0_i32_0 = arith.constant 0 : i32
    return %arg0, %c0_i32 : i32, i32
  }
  func.func @transform_16(%arg0: i32) -> (i32, i32, i32, i32) {
    %c0_i32 = arith.constant 0 : i32
    %c0_i32_0 = arith.constant 0 : i32
    %c0_i32_1 = arith.constant 0 : i32
    %c0_i32_2 = arith.constant 0 : i32
    return %arg0, %c0_i32, %c0_i32_0, %c0_i32_1 : i32, i32, i32, i32
  }
}

</mosaic_0001>

<bundles_post_ra>
// kernel: tpu_custom_call.1
= control target key start
LH: loop header
LB: loop body
LE: loop exit
PB: predicated region body
PF: predicated region fallthrough
CT: control target
= control target key end

     0   :  { %s3208_s0 = inlined_call_operand.vmem [shape: f32[16,32], index: 0, kind: input, shape index: {}]   ;;  %s3209_s1 = inlined_call_operand.vmem [shape: f32[1,32], index: 1, kind: input, shape index: {}]   ;;  %s3210_s2 = inlined_call_operand.vmem [shape: f32[1,32], index: 2, kind: input, shape index: {}]   ;;  %s3211_s3 = inlined_call_operand.vmem [shape: bf16[4,32,8], index: 3, kind: input, shape index: {}]   ;;  %s3212_s4 = inlined_call_operand.vmem [shape: f32[4,1,8], index: 4, kind: input, shape index: {}]   ;;  %s3213_s5 = inlined_call_operand.vmem [shape: bf16[4,32,8], index: 5, kind: input, shape index: {}]   ;;  %s3214_s6 = inlined_call_operand.vmem [shape: f32[4,1,8], index: 6, kind: input, shape index: {}]   ;;  %s3215_s7 = inlined_call_operand.vmem [shape: bf16[4,32,8], index: 7, kind: input, shape index: {}]   ;;  %s3216_s8 = inlined_call_operand.vmem [shape: f32[4,1,8], index: 8, kind: input, shape index: {}]   ;;  %s3217_s9 = inlined_call_operand.vmem [shape: f32[1,32], index: 9, kind: input, shape index: {}]   ;;  %s3218_s10 = inlined_call_operand.vmem [shape: f32[1,32], index: 10, kind: input, shape index: {}]   ;;  %s3219_s11 = inlined_call_operand.vmem [shape: bf16[32,64], index: 11, kind: input, shape index: {}]   ;;  %s3220_s12 = inlined_call_operand.vmem [shape: f32[1,64], index: 12, kind: input, shape index: {}]   ;;  %s3221_s13 = inlined_call_operand.vmem [shape: bf16[64,32], index: 13, kind: input, shape index: {}]   ;;  %s3222_s14 = inlined_call_operand.vmem [shape: f32[1,32], index: 14, kind: input, shape index: {}]   ;;  %s3223_s15 = inlined_call_operand.hbm [shape: f32[16,32], index: 15, kind: output, shape index: {0}]   ;;  %s3224_s16 = inlined_call_operand.hbm [shape: f32[2,4,8,8], index: 16, kind: output, shape index: {1}]  }
   0x1   :  { %3226 = sst [smem:[#allocation10_spill]] %s3208_s0 }
   0x2   :  { %3227 = sst [smem:[#allocation11_spill]] %s3209_s1 }
   0x3   :  { %3228 = sst [smem:[#allocation12_spill]] %s3210_s2 }
   0x4   :  { %3229 = sst [smem:[#allocation13_spill]] %s3211_s3 }
   0x5   :  { %3230 = sst [smem:[#allocation14_spill]] %s3212_s4 }
   0x6   :  { %3231 = sst [smem:[#allocation15_spill]] %s3213_s5 }
   0x7   :  { %3232 = sst [smem:[#allocation16_spill]] %s3214_s6 }
   0x8   :  { %3233 = sst [smem:[#allocation17_spill]] %s3215_s7 }
   0x9   :  { %22 = vsyncpa [#allocation4], 0 }
   0xa   :  { %24 = vsyncpa [#allocation4 + $0x1], 0 }
   0xb   :  { %25 = vsyncpa [#allocation6], 0 }
   0xc   :  { %27 = vsyncpa [#allocation6 + $0x1], 0  ;;  %s2762_s21 = smov 0   ;;  %s2764_s22 = smov 0  }
   0xd   :  { %s2766_s23 = smov 0   ;;  %s2768_s24 = smov 0  }
   0xe LB: > { %s2783_s25 = sadd.s32 4294967295, %s2667_s24   ;;  %s2114_s26 = sadd.s32 4294967294, %s2667_s24   ;;  %s2667_s24 = sphi %s2768_s24, %s3251_s24   ;;  %s2663_s23 = sphi %s2766_s23, %s3250_s23   ;;  %s2659_s22 = sphi %s2764_s22, %s3249_s22   ;;  %s2655_s21 = sphi %s2762_s21, %s3248_s21  }
   0xf   : > { %s2787_s27 = sadd.s32 1, %s2667_s24   ;;  %s360_s28 = sadd.s32 1, %s2663_s23 }
  0x10   : > { %s357_s29 = ssub.s32 %s2667_s24, %s2787_s27  ;;  %p370_p0 = scmp.ne.s32.totalorder %s2663_s23, %s2659_s22 }
  0x11   : > { %p358_p1 = scmp.eq.s32.totalorder %s357_s29, 0  ;;  %p371_p2 = scmp.eq.s32.totalorder %s2783_s25, 1 }
  0x12   : > { %p376_p3 = scmp.ne.s32.totalorder %s2659_s22, %s2655_s21  ;;  %p377_p4 = scmp.eq.s32.totalorder %s2114_s26, 1 }
  0x13   : > { %s2798_s30 = scalar_select %p358_p1, %s2663_s23, %s360_s28  }
  0x14   : > { %p2800_p5 = por %p371_p2, %p370_p0  ;;  %p2804_p6 = por %p377_p4, %p376_p3 }
  0x15   : > { %3234 = sst [smem:[#allocation9_spill]] %s2798_s30  ;;  %p2117_p7 = scmp.ge.s32.totalorder %s2667_s24, 1 }
  0x16   : > { %p470_p8 = scmp.lt.s32.totalorder %s2667_s24, 3 }
  0x18   : > { %p471_p9 = pnand %p2117_p7, %p470_p8 }
  0x19   : > { %p524_p10 = scmp.lt.s32.totalorder (!%p471_p9), %s2783_s25, 1  ;;  %vm530_vm0 = vcmask (!%p471_p9), 261120   ;;  %s3237_s28 = sld [smem:[#allocation10_spill]] (!%p471_p9)  ;;  %v2669_v9 = vmov (!%p471_p9), 0.0   ;;  %vm2670_vm1 = vmmov (!%p471_p9), 0   ;;  %vm757_vm2 = vcmask (!%p471_p9), 64512  }
  0x1a   : > { %474 = sbr.rel (%p471_p9) target bundleno = 4508 (0x119c), region = 80  ;;  %s3238_s3 = sld [smem:[#allocation13_spill]] (!%p471_p9)  ;;  %2307 = vmatprep.subr.bf16.mxu0 (!%p471_p9), %v2669_v9  ;;  %2315 = vmatprep.subr.bf16.mxu1 (!%p471_p9), %v2669_v9  ;;  %v2131_v37 = vld [vmem:[%s3216_s8] ss:$0 sm:$0xff] (!%p471_p9)  ;;  %vm821_vm3 = vcmask (!%p471_p9), 1043456   ;;  %vm1175_vm4 = vcmask (!%p471_p9), 130112  }
  0x1b   : > { %s3239_s5 = sld [smem:[#allocation15_spill]] (!%p471_p9)  ;;  %2311 = vmatprep.mubr.msk.bf16.mxu0 (!%p471_p9), %vm2670_vm1, %v2669_v9  ;;  %2319 = vmatprep.mubr.msk.bf16.mxu1 (!%p471_p9), %vm2670_vm1, %v2669_v9  ;;  %s3240_s1 = sld [smem:[#allocation11_spill]] (!%p471_p9)  ;;  %v2160_v61 = vld [vmem:[%s3216_s8 + $0x1] ss:$0 sm:$0xff] (!%p471_p9)  ;;  %vm1486_vm5 = vcmask (!%p471_p9), 195712   ;;  %vm1797_vm6 = vcmask (!%p471_p9), 261312  }
  0x1c   : > { %s3241_s2 = sld [smem:[#allocation12_spill]] (!%p471_p9)  ;;  %s3242_s7 = sld [smem:[#allocation17_spill]] (!%p471_p9)  ;;  %vm1942_vm7 = vcmask (!%p471_p9), 523264  }
  0x1d   : > { %s3243_s6 = sld [smem:[#allocation16_spill]] (!%p471_p9)  ;;  %s3244_s4 = sld [smem:[#allocation14_spill]] (!%p471_p9) }
  0x1e   : > { %s2919_s26 = sand.u32 (!%p471_p9), 1, %s2659_s22  }
  0x20   : > { %v2521_v7 = vld [vmem:[%s3238_s3] sm:$0xff] (!%p471_p9)   ;;  %v2523_v10 = vld [vmem:[%s3238_s3 + $0x8] sm:$0xff] (!%p471_p9)   ;;  %v2527_v43 = vld [vmem:[%s3238_s3 + $0x10] sm:$0xff] (!%p471_p9)  }
  0x21   : > { %s525_s18 = scalar_select %p524_p10, %s2783_s25, 1  ;;  %v2522_v8 = vld [vmem:[%s3239_s5] sm:$0xff]   ;;  %2308 = vmatpush3.bf16.msra.mxu0 %v2521_v7  ;;  %v2524_v11 = vld [vmem:[%s3239_s5 + $0x8] sm:$0xff]   ;;  %v2528_v48 = vld [vmem:[%s3238_s3 + $0x18] sm:$0xff]  }
  0x22   : > { %2316 = vmatpush3.bf16.msra.mxu1 %v2522_v8  ;;  %2309 = vmatprep.subr.bf16.mxu0 %v2669_v9  ;;  %v2121_v16 = vld [vmem:[%s3240_s1] ss:$0 sm:$0xff]  ;;  %v2526_v23 = vld [vmem:[%s3242_s7 + $0x8] sm:$0xff]   ;;  %v2529_v49 = vld [vmem:[%s3242_s7 + $0x10] sm:$0xff]   ;;  %s3225_s1 = smov 8  }
  0x23   : > { %s2120_s19 = sshll.u32 %s525_s18, 3  ;;  %2317 = vmatprep.subr.bf16.mxu1 %v2669_v9  ;;  %v2122_v18 = vld [vmem:[%s3241_s2] ss:$0 sm:$0xff]  ;;  %v2530_v50 = vld [vmem:[%s3242_s7 + $0x18] sm:$0xff]  }
  0x24   : > { %s527_s29 = scalar_lea.vmem %s3237_s28, %s2120_s19  ;;  %v2525_v21 = vld [vmem:[%s3242_s7] sm:$0xff]   ;;  %s2119_s28 = sshll.u32 %s2919_s26, 5 }
  0x25   : > { %v2815_v0 = vld [vmem:[%s527_s29] sm:$0xff]  ;;  %2310 = vmatpush3.bf16.msra.mxu0 %v2523_v10  ;;  %s2925_s18 = scalar_lea.vmem [#allocation5], %s2119_s28  ;;  %s2672_s19 = smov 16  }
  0x26   : > { %v531_v1 = vsel %vm530_vm0, %v2815_v0, 0.0  ;;  %2318 = vmatpush3.bf16.msra.mxu1 %v2524_v11  ;;  %2323 = vmatprep.subr.bf16.mxu0 %v2669_v9  ;;  %v2127_v24 = vld [vmem:[%s3243_s6] ss:$0 sm:$0xff]  ;;  %s2673_s28 = smov 24   ;;  %s2020_s2 = sshll.u32 %s2925_s18, 4  ;;  %s3123_s2 = int_to_ptr.vmem [resolvable:$true] %s2020_s2 }
  0x27   : > { %532 = vadd.xlane.f32.xlu0 %v531_v1  ;;  %2331 = vmatprep.subr.bf16.mxu1 %v2669_v9  ;;  %v2123_v35 = vld [vmem:[%s3244_s4] ss:$0 sm:$0xff]  ;;  %s2573_s20 = scalar_lea.vmem %s3123_s2, 512 }
  0x28   : > { %p2574_p11 = scmp.ne.s32.totalorder %s3123_s2, %s2573_s20 }
  0x2a   : > { %p2575_p12 = pnand %p2574_p11, %p2800_p5 }
  0x2c   : > { %p2576_p13 = pneg %p2575_p12 }
  0xb4   : > { %v533_v2 = vpop.xlane.xlu0 %532 }
  0xb5   : > { %v535_v3 = vmul.f32 0.03125, %v533_v2 }
  0xb7   : > { %v536_v4 = vsub.f32 %v2815_v0, %v535_v3 }
  0xb9   : > { %v537_v5 = vmul.f32 %v536_v4, %v536_v4 }
  0xbb   : > { %v538_v6 = vsel %vm530_vm0, %v537_v5, 0.0 }
  0xbc   : > { %539 = vadd.xlane.f32.xlu0 %v538_v6 }
 0x149   : > { %v540_v12 = vpop.xlane.xlu0 %539 }
 0x14a   : > { %v541_v13 = vmul.f32 0.03125, %v540_v12 }
 0x14c   : > { %v542_v14 = vadd.f32 1e-05, %v541_v13 }
 0x14e   : > { %2551 = vrsqrt.f32 %v542_v14 }
 0x158   : > { %v2552_v15 = vpop.eup %2551 }
 0x159   : > { %v544_v17 = vmul.f32 %v2552_v15, %v536_v4  ;;  %v2531_v15 = vld [vmem:[%s3239_s5 + $0x10] sm:$0xff]  }
 0x15b   : > { %v552_v19 = vmul.f32 %v2121_v16, %v544_v17  ;;  %v2532_v17 = vld [vmem:[%s3239_s5 + $0x18] sm:$0xff]  }
 0x15d   : > { %v560_v20 = vadd.f32 %v2122_v18, %v552_v19 }
 0x15f   : > { %v2852_v22 = vpack.c.bf16 %v560_v20, %v560_v20 }
 0x161   : > { %2312 = vmatmul.mubr.msk.bf16.vlgmr.msra.gmra.mrb[0].mxu0 %vm530_vm0, %v2852_v22  ;;  %2320 = vmatmul.mubr.msk.bf16.vlgmr.msra.gmra.mrb[0].mxu1 %vm530_vm0, %v2852_v22 }
 0x162   : > { %2324 = vmatpush3.bf16.msra.mxu0 %v2525_v21  ;;  %2327 = vmatprep.mubr.msk.bf16.mxu0 %vm2670_vm1, %v2669_v9 }
 0x163   : > { %2325 = vmatprep.subr.bf16.mxu0 %v2669_v9  ;;  %2333 = vmatprep.mubr.msk.bf16.mxu1 %vm2670_vm1, %v2669_v9 }
 0x166   : > { %2326 = vmatpush3.bf16.msra.mxu0 %v2526_v23  ;;  %v2151_v23 = vld [vmem:[%s3243_s6 + $0x1] ss:$0 sm:$0xff] }
 0x167   : > { %2337 = vmatprep.subr.bf16.mxu0 %v2669_v9 }
 0x169   : > { %2328 = vmatmul.mubr.msk.bf16.vlgmr.msra.gmra.mrb[4].mxu0 %vm530_vm0, %v2852_v22 }
 0x16a   : > { %2339 = vmatprep.mubr.msk.bf16.mxu0 %vm2670_vm1, %v2669_v9 }
 0x234   : > { %v622_v25 = vpop.f32.mrb[0].mxu0  ;;  %v685_v26 = vpop.f32.mrb[0].mxu1 }
 0x235   : > { %v686_v27 = vadd.f32 %v2127_v24, %v685_v26  ;;  %v2313_v28 = vpop.f32.mrb[1].mxu0  ;;  %v2321_v29 = vpop.f32.mrb[1].mxu1  ;;  %v623_v38 = vadd.f32 %v2123_v35, %v622_v25  ;;  %v2534_v35 = vld [vmem:[%s3238_s3 + $0x28] sm:$0xff]  }
 0x236   : > { %v625_v30 = vpop.f32.mrb[2].mxu0  ;;  %v688_v31 = vpop.f32.mrb[2].mxu1 }
 0x237   : > { %v755_v32 = vpack.c.bf16 %v686_v27, %v686_v27  ;;  %v2314_v33 = vpop.f32.mrb[3].mxu0  ;;  %v2322_v34 = vpop.f32.mrb[3].mxu1  ;;  %v754_v44 = vpack.c.bf16 %v623_v38, %v623_v38  ;;  %v2142_v30 = vld [vmem:[%s3244_s4 + $0x1] ss:$0 sm:$0xff] }
 0x238   : > { %v2533_v33 = vld [vmem:[%s3238_s3 + $0x20] sm:$0xff]  }
 0x239   : > { %v762_v36 = vsel %vm757_vm2, %v755_v32, 0 }
 0x23a   : > { %2332 = vmatpush3.bf16.xpose.msra.mxu1 %v762_v36  ;;  %v2535_v36 = vld [vmem:[%s3242_s7 + $0x20] sm:$0xff]  }
 0x23b   : > { %2343 = vmatprep.subr.bf16.mxu1 %v2669_v9 }
 0x23c   : > { %v748_v39 = vpop.f32.mrb[4].mxu0 }
 0x23d   : > { %v749_v40 = vadd.f32 %v2131_v37, %v748_v39  ;;  %v2329_v41 = vpop.f32.mrb[5].mxu0  ;;  %v2536_v37 = vld [vmem:[%s3242_s7 + $0x28] sm:$0xff]  }
 0x23e   : > { %v751_v42 = vpop.f32.mrb[6].mxu0 }
 0x23f   : > { %v756_v45 = vpack.c.bf16 %v749_v40, %v749_v40  ;;  %v2330_v46 = vpop.f32.mrb[7].mxu0 }
 0x241   : > { %v823_v47 = vsel %vm821_vm3, %v756_v45, 0  ;;  %2334 = vmatmul.mubr.msk.bf16.vlgmr.msra.gmra.mrb[4].mxu1 %vm757_vm2, %v754_v44 }
 0x242   : > { %2338 = vmatpush3.bf16.msra.mxu0 %v823_v47  ;;  %2344 = vmatpush3.bf16.msra.mxu1 %v2527_v43 }
 0x243   : > { %2345 = vmatprep.subr.bf16.mxu1 %v2669_v9  ;;  %2347 = vmatprep.mubr.msk.bf16.mxu1 %vm2670_vm1, %v2669_v9 }
 0x244   : > { %2351 = vmatprep.subr.bf16.mxu0 %v2669_v9 }
 0x246   : > { %2346 = vmatpush3.bf16.msra.mxu1 %v2528_v48  ;;  %v2190_v48 = vld [vmem:[%s3216_s8 + $0x2] ss:$0 sm:$0xff] }
 0x247   : > { %2359 = vmatprep.subr.bf16.mxu1 %v2669_v9 }
 0x249   : > { %2348 = vmatmul.mubr.msk.bf16.vlgmr.msra.gmra.mrb[8].mxu1 %vm530_vm0, %v2852_v22 }
 0x24a   : > { %2360 = vmatpush3.bf16.msra.mxu1 %v2529_v49  ;;  %2363 = vmatprep.mubr.msk.bf16.mxu1 %vm2670_vm1, %v2669_v9 }
 0x24b   : > { %2361 = vmatprep.subr.bf16.mxu1 %v2669_v9 }
 0x24e   : > { %2362 = vmatpush3.bf16.msra.mxu1 %v2530_v50 }
 0x24f   : > { %2373 = vmatprep.subr.bf16.mxu1 %v2669_v9 }
 0x251   : > { %2364 = vmatmul.mubr.msk.bf16.vlgmr.msra.gmra.mrb[12].mxu1 %vm530_vm0, %v2852_v22 }
 0x252   : > { %2375 = vmatprep.mubr.msk.bf16.mxu1 %vm2670_vm1, %v2669_v9 }
 0x314   : > { %v798_v51 = vpop.f32.mrb[4].mxu1 }
 0x315   : > { %v804_v52 = vmul.f32 0.35355338, %v798_v51  ;;  %v2335_v53 = vpop.f32.mrb[5].mxu1 }
 0x316   : > { %v801_v54 = vpop.f32.mrb[6].mxu1 }
 0x317   : > { %v2336_v55 = vpop.f32.mrb[7].mxu1  ;;  %v805_v56 = vsel %vm757_vm2, %v804_v52, -inf }
 0x318   : > { %806 = vmax.xlane.f32.xlu1 %v805_v56 }
 0x31c   : > { %v925_v57 = vpop.f32.mrb[8].mxu1 }
 0x31d   : > { %v2349_v58 = vpop.f32.mrb[9].mxu1  ;;  %v926_v32 = vadd.f32 %v2142_v30, %v925_v57 }
 0x31e   : > { %v928_v59 = vpop.f32.mrb[10].mxu1 }
 0x31f   : > { %v2350_v60 = vpop.f32.mrb[11].mxu1  ;;  %v1061_v34 = vpack.c.bf16 %v926_v32, %v926_v32 }
 0x324   : > { %v1055_v62 = vpop.f32.mrb[12].mxu1 }
 0x325   : > { %v1056_v63 = vadd.f32 %v2160_v61, %v1055_v62  ;;  %v2365_v1 = vpop.f32.mrb[13].mxu1 }
 0x326   : > { %v1058_v2 = vpop.f32.mrb[14].mxu1  ;;  %v2537_v1 = vld [vmem:[%s3239_s5 + $0x20] sm:$0xff]  }
 0x327   : > { %v1063_v3 = vpack.c.bf16 %v1056_v63, %v1056_v63  ;;  %v2366_v4 = vpop.f32.mrb[15].mxu1 }
 0x329   : > { %v1129_v5 = vsel %vm821_vm3, %v1063_v3, 0  ;;  %v2538_v3 = vld [vmem:[%s3239_s5 + $0x28] sm:$0xff]  }
 0x32a   : > { %2374 = vmatpush3.bf16.msra.mxu1 %v1129_v5 }
 0x32b   : > { %2387 = vmatprep.subr.bf16.mxu1 %v2669_v9 }
 0x3a5   : > { %v807_v6 = vpop.xlane.xlu1 %806 }
 0x3a6   : > { %v808_v7 = vsub.f32 %v804_v52, %v807_v6 }
 0x3a8   : > { %v809_v8 = vmul.f32 1.442695, %v808_v7 }
 0x3aa   : > { %2553 = vpow2.f32 %v809_v8  ;;  %v2181_v8 = vld [vmem:[%s3243_s6 + $0x2] ss:$0 sm:$0xff] }
 0x3b4   : > { %v2554_v10 = vpop.eup %2553 }
 0x3b5   : > { %v811_v11 = vsel %vm757_vm2, %v2554_v10, 0.0 }
 0x3b6   : > { %812 = vadd.xlane.f32.xlu1 %v811_v11 }
 0x443   : > { %v813_v12 = vpop.xlane.xlu1 %812 }
 0x444   : > { %2555 = vrcp.f32 %v813_v12 }
 0x44e   : > { %v2556_v13 = vpop.eup %2555 }
 0x44f   : > { %v815_v14 = vmul.f32 %v2556_v13, %v2554_v10 }
 0x451   : > { %v817_v16 = vpack.c.bf16 %v815_v14, %v815_v14  ;;  %816 = vst.msk [vmem:[%s2925_s18] sm:$0xff] %vm757_vm2, %v815_v14 }
 0x453   : > { %2340 = vmatmul.mubr.msk.bf16.vlgmr.msra.gmra.mrb[8].mxu0 %vm757_vm2, %v817_v16  ;;  %v2172_v16 = vld [vmem:[%s3244_s4 + $0x2] ss:$0 sm:$0xff] }
 0x454   : > { %2352 = vmatpush3.bf16.msra.mxu0 %v2531_v15  ;;  %2355 = vmatprep.mubr.msk.bf16.mxu0 %vm2670_vm1, %v2669_v9 }
 0x455   : > { %2353 = vmatprep.subr.bf16.mxu0 %v2669_v9 }
 0x458   : > { %2354 = vmatpush3.bf16.msra.mxu0 %v2532_v17 }
 0x459   : > { %2367 = vmatprep.subr.bf16.mxu0 %v2669_v9 }
 0x45b   : > { %2356 = vmatmul.mubr.msk.bf16.vlgmr.msra.gmra.mrb[12].mxu0 %vm530_vm0, %v2852_v22 }
 0x45c   : > { %2369 = vmatprep.mubr.msk.bf16.mxu0 %vm2670_vm1, %v2669_v9 }
 0x526   : > { %v859_v18 = vpop.f32.mrb[8].mxu0 }
 0x527   : > { %865 = vst.msk [vmem:[#allocation2] sm:$0xff] %vm757_vm2, %v859_v18  ;;  %v2341_v19 = vpop.f32.mrb[9].mxu0 }
 0x528   : > { %v862_v20 = vpop.f32.mrb[10].mxu0  ;;  %v2539_v19 = vld [vmem:[%s3238_s3 + $0x30] sm:$0xff]  }
 0x529   : > { %v2342_v21 = vpop.f32.mrb[11].mxu0 }
 0x52a   : > { %v2540_v21 = vld [vmem:[%s3238_s3 + $0x38] sm:$0xff]   ;;  %s2246_s3 = sshll.u32 %s2783_s25, 9 }
 0x52b   : > { %s3128_s30 = scalar_lea.hbm %s3224_s16, %s2246_s3 }
 0x52e   : > { %v990_v24 = vpop.f32.mrb[12].mxu0 }
 0x52f   : > { %v991_v25 = vadd.f32 %v2151_v23, %v990_v24  ;;  %v2357_v26 = vpop.f32.mrb[13].mxu0  ;;  %v2541_v23 = vld [vmem:[%s3242_s7 + $0x30] sm:$0xff]   ;;  %v2542_v24 = vld [vmem:[%s3242_s7 + $0x38] sm:$0xff]  }
 0x530   : > { %v993_v27 = vpop.f32.mrb[14].mxu0 }
 0x531   : > { %v1062_v28 = vpack.c.bf16 %v991_v25, %v991_v25  ;;  %v2358_v29 = vpop.f32.mrb[15].mxu0 }
 0x533   : > { %v1068_v31 = vsel %vm757_vm2, %v1062_v28, 0 }
 0x534   : > { %2368 = vmatpush3.bf16.xpose.msra.mxu0 %v1068_v31 }
 0x535   : > { %2379 = vmatprep.subr.bf16.mxu0 %v2669_v9 }
 0x53b   : > { %2370 = vmatmul.mubr.msk.bf16.vlgmr.msra.gmra.mrb[16].mxu0 %vm757_vm2, %v1061_v34 }
 0x53c   : > { %2380 = vmatpush3.bf16.msra.mxu0 %v2533_v33  ;;  %2383 = vmatprep.mubr.msk.bf16.mxu0 %vm2670_vm1, %v2669_v9 }
 0x53d   : > { %2381 = vmatprep.subr.bf16.mxu0 %v2669_v9 }
 0x540   : > { %2382 = vmatpush3.bf16.msra.mxu0 %v2534_v35  ;;  %v2220_v35 = vld [vmem:[%s3216_s8 + $0x3] ss:$0 sm:$0xff] }
 0x541   : > { %2395 = vmatprep.subr.bf16.mxu0 %v2669_v9 }
 0x543   : > { %2384 = vmatmul.mubr.msk.bf16.vlgmr.msra.gmra.mrb[20].mxu0 %vm530_vm0, %v2852_v22 }
 0x544   : > { %2396 = vmatpush3.bf16.msra.mxu0 %v2535_v36  ;;  %2399 = vmatprep.mubr.msk.bf16.mxu0 %vm2670_vm1, %v2669_v9 }
 0x545   : > { %2397 = vmatprep.subr.bf16.mxu0 %v2669_v9 }
 0x548   : > { %2398 = vmatpush3.bf16.msra.mxu0 %v2536_v37 }
 0x549   : > { %2409 = vmatprep.subr.bf16.mxu0 %v2669_v9 }
 0x54b   : > { %2400 = vmatmul.mubr.msk.bf16.vlgmr.msra.gmra.mrb[24].mxu0 %vm530_vm0, %v2852_v22 }
 0x54c   : > { %2411 = vmatprep.mubr.msk.bf16.mxu0 %vm2670_vm1, %v2669_v9 }
 0x60e   : > { %v1104_v38 = vpop.f32.mrb[16].mxu0 }
 0x60f   : > { %v1110_v39 = vmul.f32 0.35355338, %v1104_v38  ;;  %v2371_v40 = vpop.f32.mrb[17].mxu0 }
 0x610   : > { %v1107_v41 = vpop.f32.mrb[18].mxu0 }
 0x611   : > { %v2372_v42 = vpop.f32.mrb[19].mxu0  ;;  %v1111_v43 = vsel %vm757_vm2, %v1110_v39, -inf }
 0x612   : > { %1112 = vmax.xlane.f32.xlu0 %v1111_v43 }
 0x616   : > { %v1236_v44 = vpop.f32.mrb[20].mxu0 }
 0x617   : > { %v2385_v45 = vpop.f32.mrb[21].mxu0  ;;  %v1237_v18 = vadd.f32 %v2172_v16, %v1236_v44 }
 0x618   : > { %v1239_v46 = vpop.f32.mrb[22].mxu0 }
 0x619   : > { %v2386_v47 = vpop.f32.mrb[23].mxu0  ;;  %v1372_v20 = vpack.c.bf16 %v1237_v18, %v1237_v18 }
 0x61e   : > { %v1366_v49 = vpop.f32.mrb[24].mxu0 }
 0x61f   : > { %v1367_v50 = vadd.f32 %v2190_v48, %v1366_v49  ;;  %v2401_v51 = vpop.f32.mrb[25].mxu0 }
 0x620   : > { %v1369_v52 = vpop.f32.mrb[26].mxu0  ;;  %v2543_v51 = vld [vmem:[%s3239_s5 + $0x30] sm:$0xff]  }
 0x621   : > { %v1374_v53 = vpack.c.bf16 %v1367_v50, %v1367_v50  ;;  %v2402_v54 = vpop.f32.mrb[27].mxu0 }
 0x623   : > { %v1440_v55 = vsel %vm821_vm3, %v1374_v53, 0  ;;  %v2544_v53 = vld [vmem:[%s3239_s5 + $0x38] sm:$0xff]  }
 0x624   : > { %2410 = vmatpush3.bf16.msra.mxu0 %v1440_v55 }
 0x625   : > { %2423 = vmatprep.subr.bf16.mxu0 %v2669_v9 }
 0x69f   : > { %v1113_v56 = vpop.xlane.xlu0 %1112 }
 0x6a0   : > { %v1114_v57 = vsub.f32 %v1110_v39, %v1113_v56 }
 0x6a2   : > { %v1115_v58 = vmul.f32 1.442695, %v1114_v57 }
 0x6a4   : > { %2557 = vpow2.f32 %v1115_v58  ;;  %v2211_v58 = vld [vmem:[%s3243_s6 + $0x3] ss:$0 sm:$0xff] }
 0x6ae   : > { %v2558_v59 = vpop.eup %2557 }
 0x6af   : > { %v1117_v60 = vsel %vm757_vm2, %v2558_v59, 0.0 }
 0x6b0   : > { %1118 = vadd.xlane.f32.xlu1 %v1117_v60 }
 0x73d   : > { %v1119_v61 = vpop.xlane.xlu1 %1118 }
 0x73e   : > { %2559 = vrcp.f32 %v1119_v61 }
 0x748   : > { %v2560_v62 = vpop.eup %2559 }
 0x749   : > { %v1121_v63 = vmul.f32 %v2560_v62, %v2558_v59 }
 0x74b   : > { %v1124_v2 = vpack.c.bf16 %v1121_v63, %v1121_v63  ;;  %2165 = vst.msk [vmem:[%s2925_s18 + $0x8] sm:$0xff] %vm757_vm2, %v1121_v63 }
 0x74d   : > { %2376 = vmatmul.mubr.msk.bf16.vlgmr.msra.gmra.mrb[16].mxu1 %vm757_vm2, %v1124_v2 }
 0x74e   : > { %2388 = vmatpush3.bf16.msra.mxu1 %v2537_v1  ;;  %2391 = vmatprep.mubr.msk.bf16.mxu1 %vm2670_vm1, %v2669_v9 }
 0x74f   : > { %2389 = vmatprep.subr.bf16.mxu1 %v2669_v9 }
 0x752   : > { %2390 = vmatpush3.bf16.msra.mxu1 %v2538_v3 }
 0x753   : > { %2403 = vmatprep.subr.bf16.mxu1 %v2669_v9 }
 0x755   : > { %2392 = vmatmul.mubr.msk.bf16.vlgmr.msra.gmra.mrb[20].mxu1 %vm530_vm0, %v2852_v22 }
 0x756   : > { %2405 = vmatprep.mubr.msk.bf16.mxu1 %vm2670_vm1, %v2669_v9 }
 0x820   : > { %v3001_v4 = vpop.f32.mrb[16].mxu1 }
 0x821   : > { %v2377_v5 = vpop.f32.mrb[17].mxu1 }
 0x822   : > { %v1168_v6 = vpop.f32.mrb[18].mxu1 }
 0x823   : > { %v2378_v7 = vpop.f32.mrb[19].mxu1 }
 0x828   : > { %v1301_v10 = vpop.f32.mrb[20].mxu1 }
 0x829   : > { %v1302_v11 = vadd.f32 %v2181_v8, %v1301_v10  ;;  %v2393_v12 = vpop.f32.mrb[21].mxu1 }
 0x82a   : > { %v1304_v13 = vpop.f32.mrb[22].mxu1 }
 0x82b   : > { %v1373_v14 = vpack.c.bf16 %v1302_v11, %v1302_v11  ;;  %v2394_v15 = vpop.f32.mrb[23].mxu1 }
 0x82d   : > { %v1379_v17 = vsel %vm757_vm2, %v1373_v14, 0 }
 0x82e   : > { %2404 = vmatpush3.bf16.xpose.msra.mxu1 %v1379_v17 }
 0x82f   : > { %2415 = vmatprep.subr.bf16.mxu1 %v2669_v9 }
 0x835   : > { %2406 = vmatmul.mubr.msk.bf16.vlgmr.msra.gmra.mrb[24].mxu1 %vm757_vm2, %v1372_v20 }
 0x836   : > { %2416 = vmatpush3.bf16.msra.mxu1 %v2539_v19  ;;  %2419 = vmatprep.mubr.msk.bf16.mxu1 %vm2670_vm1, %v2669_v9 }
 0x837   : > { %2417 = vmatprep.subr.bf16.mxu1 %v2669_v9 }
 0x83a   : > { %2418 = vmatpush3.bf16.msra.mxu1 %v2540_v21 }
 0x83b   : > { %2431 = vmatprep.subr.bf16.mxu1 %v2669_v9 }
 0x83d   : > { %2420 = vmatmul.mubr.msk.bf16.vlgmr.msra.gmra.mrb[28].mxu1 %vm530_vm0, %v2852_v22 }
 0x83e   : > { %2432 = vmatpush3.bf16.msra.mxu1 %v2541_v23  ;;  %2435 = vmatprep.mubr.msk.bf16.mxu1 %vm2670_vm1, %v2669_v9 }
 0x83f   : > { %2433 = vmatprep.subr.bf16.mxu1 %v2669_v9 }
 0x842   : > { %2434 = vmatpush3.bf16.msra.mxu1 %v2542_v24 }
 0x843   : > { %2445 = vmatprep.subr.bf16.mxu1 %v2669_v9 }
 0x845   : > { %2436 = vmatmul.mubr.msk.bf16.vlgmr.msra.gmra.mrb[32].mxu1 %vm530_vm0, %v2852_v22 }
 0x846   : > { %2447 = vmatprep.mubr.msk.bf16.mxu1 %vm2670_vm1, %v2669_v9 }
 0x908   : > { %v1415_v25 = vpop.f32.mrb[24].mxu1 }
 0x909   : > { %v1421_v26 = vmul.f32 0.35355338, %v1415_v25  ;;  %v2407_v27 = vpop.f32.mrb[25].mxu1 }
 0x90a   : > { %v1418_v28 = vpop.f32.mrb[26].mxu1 }
 0x90b   : > { %v2408_v29 = vpop.f32.mrb[27].mxu1  ;;  %v1422_v30 = vsel %vm757_vm2, %v1421_v26, -inf }
 0x90c   : > { %1423 = vmax.xlane.f32.xlu0 %v1422_v30 }
 0x910   : > { %v1547_v31 = vpop.f32.mrb[28].mxu1 }
 0x911   : > { %v2421_v32 = vpop.f32.mrb[29].mxu1 }
 0x912   : > { %v1550_v33 = vpop.f32.mrb[30].mxu1 }
 0x913   : > { %v2422_v34 = vpop.f32.mrb[31].mxu1 }
 0x918   : > { %v1677_v36 = vpop.f32.mrb[32].mxu1 }
 0x919   : > { %v1678_v37 = vadd.f32 %v2220_v35, %v1677_v36  ;;  %v2437_v38 = vpop.f32.mrb[33].mxu1 }
 0x91a   : > { %v1680_v39 = vpop.f32.mrb[34].mxu1 }
 0x91b   : > { %v1685_v40 = vpack.c.bf16 %v1678_v37, %v1678_v37  ;;  %v2438_v41 = vpop.f32.mrb[35].mxu1  ;;  %v2545_v37 = vld [vmem:[%s3219_s11] sm:$0xff]  }
 0x91d   : > { %v1751_v42 = vsel %vm821_vm3, %v1685_v40, 0 }
 0x91e   : > { %2446 = vmatpush3.bf16.msra.mxu1 %v1751_v42  ;;  %v2227_v42 = vld [vmem:[%s3217_s9] ss:$0 sm:$0xff] }
 0x91f   : > { %2459 = vmatprep.subr.bf16.mxu1 %v2669_v9 }
 0x999   : > { %v1424_v43 = vpop.xlane.xlu0 %1423 }
 0x99a   : > { %v1425_v44 = vsub.f32 %v1421_v26, %v1424_v43 }
 0x99c   : > { %v1426_v45 = vmul.f32 1.442695, %v1425_v44  ;;  %v2228_v44 = vld [vmem:[%s3218_s10] ss:$0 sm:$0xff] }
 0x99e   : > { %2561 = vpow2.f32 %v1426_v45 }
 0x9a8   : > { %v2562_v46 = vpop.eup %2561 }
 0x9a9   : > { %v1428_v47 = vsel %vm757_vm2, %v2562_v46, 0.0 }
 0x9aa   : > { %1429 = vadd.xlane.f32.xlu1 %v1428_v47 }
 0xa37   : > { %v1430_v48 = vpop.xlane.xlu1 %1429 }
 0xa38   : > { %2563 = vrcp.f32 %v1430_v48  ;;  %v2547_v48 = vld [vmem:[%s3221_s13] sm:$0xff]  }
 0xa42   : > { %v2564_v49 = vpop.eup %2563 }
 0xa43   : > { %v1432_v50 = vmul.f32 %v2564_v49, %v2562_v46  ;;  %v2548_v49 = vld [vmem:[%s3221_s13 + $0x8] sm:$0xff]  }
 0xa45   : > { %v1435_v52 = vpack.c.bf16 %v1432_v50, %v1432_v50  ;;  %2195 = vst.msk [vmem:[%s2925_s18 + $0x10] sm:$0xff] %vm757_vm2, %v1432_v50  ;;  %v2549_v50 = vld [vmem:[%s3221_s13 + $0x10] sm:$0xff]  }
 0xa47   : > { %2412 = vmatmul.mubr.msk.bf16.vlgmr.msra.gmra.mrb[28].mxu0 %vm757_vm2, %v1435_v52  ;;  %v2229_v52 = vld [vmem:[%s3220_s12] ss:$0 sm:$0xff] }
 0xa48   : > { %2424 = vmatpush3.bf16.msra.mxu0 %v2543_v51  ;;  %2427 = vmatprep.mubr.msk.bf16.mxu0 %vm2670_vm1, %v2669_v9  ;;  %v2550_v51 = vld [vmem:[%s3221_s13 + $0x18] sm:$0xff]  }
 0xa49   : > { %2425 = vmatprep.subr.bf16.mxu0 %v2669_v9 }
 0xa4c   : > { %2426 = vmatpush3.bf16.msra.mxu0 %v2544_v53 }
 0xa4d   : > { %2439 = vmatprep.subr.bf16.mxu0 %v2669_v9 }
 0xa4f   : > { %2428 = vmatmul.mubr.msk.bf16.vlgmr.msra.gmra.mrb[32].mxu0 %vm530_vm0, %v2852_v22  ;;  %v2202_v22 = vld [vmem:[%s3244_s4 + $0x3] ss:$0 sm:$0xff] }
 0xa50   : > { %2441 = vmatprep.mubr.msk.bf16.mxu0 %vm2670_vm1, %v2669_v9  ;;  %v1548_v3 = vadd.f32 %v2202_v22, %v1547_v31 }
 0xa52   : > { %v1683_v5 = vpack.c.bf16 %v1548_v3, %v1548_v3 }
 0xb1a   : > { %v1476_v54 = vpop.f32.mrb[28].mxu0 }
 0xb1b   : > { %v2413_v55 = vpop.f32.mrb[29].mxu0 }
 0xb1c   : > { %v1479_v56 = vpop.f32.mrb[30].mxu0 }
 0xb1d   : > { %v2414_v57 = vpop.f32.mrb[31].mxu0 }
 0xb22   : > { %v1612_v59 = vpop.f32.mrb[32].mxu0 }
 0xb23   : > { %v1613_v60 = vadd.f32 %v2211_v58, %v1612_v59  ;;  %v2429_v61 = vpop.f32.mrb[33].mxu0 }
 0xb24   : > { %v1615_v62 = vpop.f32.mrb[34].mxu0 }
 0xb25   : > { %v1684_v63 = vpack.c.bf16 %v1613_v60, %v1613_v60  ;;  %v2430_v1 = vpop.f32.mrb[35].mxu0 }
 0xb27   : > { %v1690_v2 = vsel %vm757_vm2, %v1684_v63, 0 }
 0xb28   : > { %2440 = vmatpush3.bf16.xpose.msra.mxu0 %v1690_v2 }
 0xb29   : > { %2451 = vmatprep.subr.bf16.mxu0 %v2669_v9 }
 0xb2f   : > { %2442 = vmatmul.mubr.msk.bf16.vlgmr.msra.gmra.mrb[36].mxu0 %vm757_vm2, %v1683_v5 }
 0xb30   : > { %2455 = vmatprep.mubr.msk.bf16.mxu0 %vm2670_vm1, %v2669_v9  ;;  %2452 = vmatpush3.bf16.msra.mxu0 %v2545_v37 }
 0xb31   : > { %2453 = vmatprep.subr.bf16.mxu0 %v2669_v9 }
 0xc02   : > { %v1726_v6 = vpop.f32.mrb[36].mxu0 }
 0xc03   : > { %v1732_v7 = vmul.f32 0.35355338, %v1726_v6  ;;  %v2443_v8 = vpop.f32.mrb[37].mxu0 }
 0xc04   : > { %v1729_v10 = vpop.f32.mrb[38].mxu0 }
 0xc05   : > { %v2444_v11 = vpop.f32.mrb[39].mxu0  ;;  %v1733_v12 = vsel %vm757_vm2, %v1732_v7, -inf }
 0xc06   : > { %1734 = vmax.xlane.f32.xlu0 %v1733_v12 }
 0xc1c   : > { %1172 = vrot.lane.b32.xlu0 %v3001_v4, %s3225_s1 }
 0xc93   : > { %v1735_v13 = vpop.xlane.xlu0 %1734 }
 0xc94   : > { %v1736_v14 = vsub.f32 %v1732_v7, %v1735_v13 }
 0xc96   : > { %v1737_v15 = vmul.f32 1.442695, %v1736_v14 }
 0xc97   : > { %v1173_v16 = vpop.permute.xlu0 %1172 }
 0xc98   : > { %2565 = vpow2.f32 %v1737_v15  ;;  %1176 = vst.msk [vmem:[#allocation2] sm:$0xff] %vm1175_vm4, %v1173_v16 }
 0xca2   : > { %v2566_v17 = vpop.eup %2565 }
 0xca3   : > { %v1739_v18 = vsel %vm757_vm2, %v2566_v17, 0.0 }
 0xca4   : > { %1740 = vadd.xlane.f32.xlu1 %v1739_v18 }
 0xcb5   : > { %1483 = vrot.lane.b32.xlu1 %v1476_v54, %s2672_s19  ;;  %s2674_s19 = smov [#allocation5]  }
 0xcb6   : > { %s2577_s4 = sshll.u32 %s2674_s19, 4  ;;  %s2578_s4 = int_to_ptr.vmem [resolvable:$false] %s2577_s4 }
 0xcb7   : > { %p2580_p0 = scmp.lt.s32.totalorder %s3123_s2, %s2578_s4 }
 0xd31   : > { %v1741_v19 = vpop.xlane.xlu1 %1740 }
 0xd32   : > { %2567 = vrcp.f32 %v1741_v19 }
 0xd35   : > { %v1484_v20 = vpop.permute.xlu1 %1483 }
 0xd36   : > { %1487 = vst.msk [vmem:[#allocation2] sm:$0xff] %vm1486_vm5, %v1484_v20 }
 0xd3c   : > { %v2568_v4 = vpop.eup %2567 }
 0xd3d   : > { %v1743_v21 = vmul.f32 %v2568_v4, %v2566_v17 }
 0xd3f   : > { %v1746_v23 = vpack.c.bf16 %v1743_v21, %v1743_v21  ;;  %2225 = vst.msk [vmem:[%s2925_s18 + $0x18] sm:$0xff] %vm757_vm2, %v1743_v21  ;;  %s2579_s18 = scalar_lea.vmem %s2578_s4, 1024 }
 0xd40   : > { %p2581_p1 = scmp.lt.s32.totalorder %s2579_s18, %s2573_s20 }
 0xd41   : > { %2448 = vmatmul.mubr.msk.bf16.vlgmr.msra.gmra.mrb[36].mxu1 %vm757_vm2, %v1746_v23 }
 0xd42   : > { %2467 = vmatprep.mubr.msk.bf16.mxu1 %vm2670_vm1, %v2669_v9  ;;  %2460 = vmatpush3.bf16.msra.mxu1 %v2547_v48  ;;  %p2582_p2 = por %p2581_p1, %p2580_p0 }
 0xd43   : > { %2461 = vmatprep.subr.bf16.mxu1 %v2669_v9 }
 0xd44   : > { %p2583_p3 = pnand %p2582_p2, %p2576_p13 }
 0xd46   : > { %2462 = vmatpush3.bf16.msra.mxu1 %v2548_v49 }
 0xd47   : > { %2463 = vmatprep.subr.bf16.mxu1 %v2669_v9 }
 0xd4a   : > { %2464 = vmatpush3.bf16.msra.mxu1 %v2549_v50 }
 0xd4b   : > { %2465 = vmatprep.subr.bf16.mxu1 %v2669_v9 }
 0xd4e   : > { %2466 = vmatpush3.bf16.msra.mxu1 %v2550_v51 }
 0xe14   : > { %v1787_v24 = vpop.f32.mrb[36].mxu1 }
 0xe15   : > { %1794 = vrot.lane.b32.xlu1 %v1787_v24, %s2673_s28  ;;  %v2449_v25 = vpop.f32.mrb[37].mxu1 }
 0xe16   : > { %v1790_v26 = vpop.f32.mrb[38].mxu1 }
 0xe17   : > { %v2450_v27 = vpop.f32.mrb[39].mxu1 }
 0xe87   : > { %v1795_v28 = vpop.permute.xlu1 %1794 }
 0xe88   : > { %1798 = vst.msk [vmem:[#allocation2] sm:$0xff] %vm1797_vm6, %v1795_v28 }
 0xe8f   : > { %v1799_v29 = vld [vmem:[#allocation2] sm:$0xff] }
 0xe90   : > { %v3083_v30 = vadd.f32 %v1799_v29, %v2815_v0  ;;  %v2546_v0 = vld [vmem:[%s3219_s11 + $0x8] sm:$0xff]  }
 0xe91   : > { %2454 = vmatpush3.bf16.msra.mxu0 %v2546_v0 }
 0xe92   : > { %v1801_v31 = vsel %vm530_vm0, %v3083_v30, 0.0 }
 0xe93   : > { %1802 = vadd.xlane.f32.xlu1 %v1801_v31 }
 0xf20   : > { %v1803_v32 = vpop.xlane.xlu1 %1802 }
 0xf21   : > { %v1804_v33 = vmul.f32 0.03125, %v1803_v32 }
 0xf23   : > { %v1805_v34 = vsub.f32 %v3083_v30, %v1804_v33 }
 0xf25   : > { %v1806_v35 = vmul.f32 %v1805_v34, %v1805_v34 }
 0xf27   : > { %v1807_v36 = vsel %vm530_vm0, %v1806_v35, 0.0 }
 0xf28   : > { %1808 = vadd.xlane.f32.xlu0 %v1807_v36 }
 0xfb5   : > { %v1809_v38 = vpop.xlane.xlu0 %1808 }
 0xfb6   : > { %v1810_v39 = vmul.f32 0.03125, %v1809_v38 }
 0xfb8   : > { %v1811_v40 = vadd.f32 1e-05, %v1810_v39 }
 0xfba   : > { %2569 = vrsqrt.f32 %v1811_v40 }
 0xfc4   : > { %v2570_v41 = vpop.eup %2569 }
 0xfc5   : > { %v1813_v43 = vmul.f32 %v2570_v41, %v1805_v34 }
 0xfc7   : > { %v1821_v45 = vmul.f32 %v2227_v42, %v1813_v43 }
 0xfc9   : > { %v1829_v46 = vadd.f32 %v2228_v44, %v1821_v45 }
 0xfcb   : > { %v1830_v47 = vpack.c.bf16 %v1829_v46, %v1829_v46 }
 0xfcd   : > { %2456 = vmatmul.mubr.msk.bf16.vlgmr.msra.gmra.mrb[40].mxu0 %vm530_vm0, %v1830_v47 }
0x10a0   : > { %v1891_v53 = vpop.f32.mrb[40].mxu0 }
0x10a1   : > { %v1892_v54 = vadd.f32 %v2229_v52, %v1891_v53  ;;  %v2457_v55 = vpop.f32.mrb[41].mxu0 }
0x10a2   : > { %v1894_v56 = vpop.f32.mrb[42].mxu0 }
0x10a3   : > { %v1898_v57 = vmul.f32 0.70710677, %v1892_v54  ;;  %v2458_v58 = vpop.f32.mrb[43].mxu0  ;;  %v1897_v59 = vmul.f32 0.5, %v1892_v54 }
0x10a5   : > { %2571 = verf.f32 %v1898_v57 }
0x10af   : > { %v2572_v9 = vpop.eup %2571 }
0x10b0   : > { %v1900_v60 = vadd.f32 1.0, %v2572_v9 }
0x10b2   : > { %v1901_v61 = vmul.f32 %v1900_v60, %v1897_v59 }
0x10b4   : > { %v1902_v62 = vpack.c.bf16 %v1901_v61, %v1901_v61 }
0x10b6   : > { %2468 = vmatmul.mubr.msk.bf16.vlgmr.msra.gmra.mrb[40].mxu1 %vm1942_vm7, %v1902_v62 }
0x10b7   : > { %2586 = shalt.err (!%p2583_p3)
}
0x10b8   : > { %s2587_s3 = scalar_lea.hbm %s3128_s30, 512  ;;  %s2591_s19 = scalar_lea.hbm %s3224_s16, 1024 }
0x10b9   : > { %p2588_p4 = scmp.ne.s32.totalorder %s3128_s30, %s2587_s3  ;;  %p2592_p9 = scmp.lt.u32.totalorder %s3128_s30, %s3224_s16 }
0x10ba   : > { %p2593_p10 = scmp.lt.u32.totalorder %s2591_s19, %s2587_s3  ;;  %p2595_p12 = scmp.lt.u32.totalorder %s2587_s3, %s3128_s30 }
0x10bb   : > { %p2589_p7 = pnand %p2588_p4, %p2800_p5 }
0x10bc   : > { %p2594_p11 = por %p2593_p10, %p2592_p9 }
0x10bd   : > { %p2590_p8 = pneg %p2589_p7 }
0x10be   : > { %p2596_p13 = por %p2595_p12, %p2594_p11 }
0x10c0   : > { %p2597_p0 = pnand %p2596_p13, %p2590_p8 }
0x10c2   : > { %2600 = shalt.err (!%p2597_p0)
}
0x10c3   : > { %s2675_s20 = smov 128   ;;  %s3245_s18 = smov 8   ;;  %v2233_v63 = vld [vmem:[%s3222_s14] ss:$0 sm:$0xff] }
0x10c4   : > { %s3246_s5 = scalar_lea.sflag [#allocation6], %s2919_s26  ;;  %s2118_s29 = sshll.u32 %s2919_s26, 3 }
0x10c5   : > { %2472 = dma.vmem_to_hbm [thread:$0]  (%p2800_p5), %s3123_s2, 512, %s3128_s30, %s3246_s5, %s2675_s20, %s2675_s20, %s3245_s18  }
0x10c6   : > { %s2241_s3 = sshll.u32 %s2783_s25, 7  ;;  %s516_s19 = scalar_lea.vmem [#allocation3], %s2118_s29 }
0x10c7   : > { %s2007_s4 = sshll.u32 %s516_s19, 4  ;;  %s3164_s5 = scalar_lea.hbm %s3223_s15, %s2241_s3  ;;  %s3166_s4 = int_to_ptr.vmem [resolvable:$true] %s2007_s4 }
0x10c8   : > { %s1989_s25 = scalar_lea.sflag [#allocation4], %s2919_s26  ;;  %s2601_s2 = scalar_lea.vmem %s3166_s4, 128 }
0x10c9   : > { %p2602_p1 = scmp.ne.s32.totalorder %s3166_s4, %s2601_s2  ;;  %s2676_s30 = smov [#allocation3]  }
0x10ca   : > { %s2605_s20 = sshll.u32 %s2676_s30, 4  ;;  %s2606_s20 = int_to_ptr.vmem [resolvable:$false] %s2605_s20 }
0x10cb   : > { %p2603_p2 = pnand %p2602_p1, %p2800_p5  ;;  %s2607_s18 = scalar_lea.vmem %s2606_s20, 256 }
0x10cc   : > { %p2608_p4 = scmp.lt.s32.totalorder %s3166_s4, %s2606_s20  ;;  %p2609_p7 = scmp.lt.s32.totalorder %s2607_s18, %s2601_s2 }
0x10cd   : > { %p2604_p3 = pneg %p2603_p2 }
0x10ce   : > { %p2610_p8 = por %p2609_p7, %p2608_p4 }
0x10d0   : > { %p2611_p9 = pnand %p2610_p8, %p2604_p3 }
0x1189   : > { %v1980_v1 = vpop.f32.mrb[40].mxu1 }
0x118a   : > { %v1981_v22 = vadd.f32 %v2233_v63, %v1980_v1  ;;  %v2469_v2 = vpop.f32.mrb[41].mxu1 }
0x118b   : > { %v1983_v3 = vpop.f32.mrb[42].mxu1 }
0x118c   : > { %v1986_v5 = vadd.f32 %v1981_v22, %v3083_v30  ;;  %v2470_v6 = vpop.f32.mrb[43].mxu1 }
0x118e   : > { %1987 = vst.msk [vmem:[%s516_s19] sm:$0xff] %vm530_vm0, %v1986_v5 }
0x118f   : > { %2614 = shalt.err (!%p2611_p9)
}
0x1190   : > { %s2615_s6 = scalar_lea.hbm %s3164_s5, 128  ;;  %s2619_s29 = scalar_lea.hbm %s3223_s15, 256 }
0x1191   : > { %p2616_p10 = scmp.ne.s32.totalorder %s3164_s5, %s2615_s6  ;;  %p2620_p13 = scmp.lt.u32.totalorder %s3164_s5, %s3223_s15 }
0x1192   : > { %p2621_p0 = scmp.lt.u32.totalorder %s2619_s29, %s2615_s6  ;;  %p2623_p2 = scmp.lt.u32.totalorder %s2615_s6, %s3164_s5 }
0x1193   : > { %p2617_p11 = pnand %p2616_p10, %p2800_p5 }
0x1194   : > { %p2622_p1 = por %p2621_p0, %p2620_p13 }
0x1195   : > { %p2618_p12 = pneg %p2617_p11 }
0x1196   : > { %p2624_p3 = por %p2623_p2, %p2622_p1 }
0x1198   : > { %p2625_p4 = pnand %p2624_p3, %p2618_p12 }
0x119a   : > { %2628 = shalt.err (!%p2625_p4)
}
0x119b   : > { %2471 = dma.vmem_to_hbm [thread:$0]  (%p2800_p5), %s3166_s4, 128, %s3164_s5, %s1989_s25  }
0x119c PF: > { %p2482_p7 = scmp.ge.s32.totalorder %s2667_s24, 2  ;;  %s2035_s3 = sand.u32 1, %s2655_s21  }
0x119d   : > { %s2036_s19 = scalar_lea.sflag [#allocation4], %s2035_s3 }
0x119e   : > { %p2476_p8 = pnand %p2482_p7, %p2804_p6 }
0x11a0   : > { %2646 = dma.done.wait (!%p2476_p8), %s2036_s19, 128  }
0x11a1   : > { %2648 = vsyncadd (!%p2476_p8), %s2036_s19, 4294967168  ;;  %s2045_s2 = scalar_lea.sflag [#allocation6], %s2035_s3 }
0x11a2   : > { %2650 = dma.done.wait (!%p2476_p8), %s2045_s2, 512  }
0x11a3   : > { %2652 = vsyncadd (!%p2476_p8), %s2045_s2, 4294966784  ;;  %s3247_s0 = sld [smem:[#allocation9_spill]]  ;;  %p30_p5 = scmp.ge.s32.totalorder %s2787_s27, 4  }
0x11a4   : > { %s3248_s21 = smov %s2659_s22  ;;  %s3249_s22 = smov %s2663_s23 }
0x11a5   : > { %s3251_s24 = smov %s2787_s27  ;;  %32 = sbr.rel (!%p30_p5) target bundleno = 14 (0xe), region = 153 }
0x11a9   : > { %s3250_s23 = smov %s3247_s0 }
0x11ac   :  { %2050 = vsyncpa [#allocation4], 1 }
0x11ad   :  { %2052 = vsyncpa [#allocation4 + $0x1], 1 }
0x11ae   :  { %2053 = vsyncpa [#allocation6], 1 }
0x11af   :  { %2055 = vsyncpa [#allocation6 + $0x1], 1 }

</bundles_post_ra>
